<compile_context>
chip_gen: v7x
topology: tpu7x:2x2x1
jax: 0.10.0
libtpu: 0.0.40
codegen_flags: <defaults>
</compile_context>

<pallas_src>
import math

import jax
import jax.numpy as jnp
from jax.experimental import pallas as pl
from jax.experimental.pallas import tpu as pltpu


def _gather_body(ids_ref, tok_hbm, pos_ref, out_ref, gbuf, sems, *,
                 S, T, C, use_rotary):
    """One grid step: chunk-pipelined gather of T token rows (+ positional add)."""
    V = tok_hbm.shape[0]
    n_chunks = T // C
    sb = pl.program_id(0)          # sequence-block index (outer)
    b = pl.program_id(1)           # batch index (inner)
    base = b * S + sb * T          # flat offset of this block's ids in SMEM

    def issue(c):
        # Read token ids from SMEM and launch C single-row HBM->VMEM DMAs.
        # Scalar id reads happen BEFORE any semaphore wait.
        off = base + c * C
        dst = c * C
        slot = c & 1
        for i in range(C):         # C <= 8: cheap static unroll
            tok = ids_ref[off + i]
            # Defensive clamp: PyTorch nn.Embedding would raise on OOB ids; we
            # clamp instead of issuing an out-of-bounds DMA.
            tok = jnp.minimum(jnp.maximum(tok, 0), V - 1)
            pltpu.make_async_copy(
                tok_hbm.at[pl.ds(tok, 1), :],
                gbuf.at[pl.ds(dst + i, 1), :],
                sems.at[slot],
            ).start()

    def wait(c):
        slot = c & 1
        for _ in range(C):
            pltpu.make_async_copy(
                tok_hbm.at[pl.ds(0, 1), :],
                gbuf.at[pl.ds(0, 1), :],
                sems.at[slot],
            ).wait()

    issue(0)                       # prime the first chunk

    @pl.loop(0, n_chunks)
    def _(c):
        @pl.when(c + 1 < n_chunks)
        def _():
            issue(c + 1)           # next chunk flies while we drain this one
        wait(c)
        r = pl.multiple_of(c * C, C)
        rows = gbuf[pl.ds(r, C), :]
        if not use_rotary:
            rows = rows + pos_ref[pl.ds(r, C), :]
        out_ref[pl.ds(r, C), :] = rows.astype(out_ref.dtype)


def _make_kernel(S, T, C, use_rotary):
    if use_rotary:
        def kernel(ids_ref, tok_hbm, out_ref, gbuf, sems):
            _gather_body(ids_ref, tok_hbm, None, out_ref, gbuf, sems,
                         S=S, T=T, C=C, use_rotary=True)
    else:
        def kernel(ids_ref, tok_hbm, pos_ref, out_ref, gbuf, sems):
            _gather_body(ids_ref, tok_hbm, pos_ref, out_ref, gbuf, sems,
                         S=S, T=T, C=C, use_rotary=False)
    return kernel


def _pick_block_seq(S, H, itemsize, target, vmem_budget=24 << 20):
    """Largest multiple-of-8 divisor of S that fits the target and VMEM budget."""
    # ~5 resident tiles per step: gbuf + double-buffered pos + double-buffered out.
    cap = max(8, vmem_budget // (5 * H * itemsize))
    limit = max(1, min(target, cap, S))
    best = 0
    d = 8
    while d <= limit:
        if S % d == 0:
            best = d
        d += 8
    if best:
        return best
    # Rare fallback: S has no multiple-of-8 divisor -> one whole-sequence block.
    return S


def token_embedding(input_ids, token_table, pos_table=None, *, use_rotary=False,
                    block_seq=128):
    """Pallas equivalent of TokenEmbedding.forward.

    input_ids:   (B, S) int
    token_table: (vocab, H) float
    pos_table:   (max_pos, H) float (ignored when use_rotary=True)
    returns:     (B, S, H) in token_table.dtype
    """
    B, S = input_ids.shape
    V, H = token_table.shape
    ids = input_ids.reshape(-1).astype(jnp.int32)   # 1-D -> no SMEM row padding

    itemsize = jnp.dtype(token_table.dtype).itemsize
    T = _pick_block_seq(S, H, itemsize, block_seq)
    C = math.gcd(T, 8)            # chunk size for the intra-step DMA pipeline
    n_sblk = S // T

    out_shape = jax.ShapeDtypeStruct((B, S, H), token_table.dtype)
    n_bufs = 3 if use_rotary else 5                 # gbuf + 2*out (+ 2*pos)
    needed = n_bufs * T * H * itemsize
    vmem_limit = min(max(int(1.5 * needed) + (2 << 20), 32 << 20), 48 << 20)
    cparams = pltpu.CompilerParams(
        dimension_semantics=("parallel", "parallel"),
        vmem_limit_bytes=vmem_limit)
    scratch = [
        pltpu.VMEM((T, H), token_table.dtype),      # gathered token rows
        pltpu.SemaphoreType.DMA((2,)),              # one sem per in-flight chunk
    ]
    out_spec = pl.BlockSpec((None, T, H), lambda sb, b, ids: (b, sb, 0))
    kernel = _make_kernel(S, T, C, use_rotary)

    if use_rotary:
        grid_spec = pltpu.PrefetchScalarGridSpec(
            num_scalar_prefetch=1,                  # flattened input_ids -> SMEM
            grid=(n_sblk, B),
            in_specs=[pl.BlockSpec(memory_space=pl.ANY)],   # token table in HBM
            out_specs=out_spec,
            scratch_shapes=scratch)
        return pl.pallas_call(kernel, out_shape=out_shape, grid_spec=grid_spec,
                              compiler_params=cparams)(ids, token_table)

    assert pos_table is not None and pos_table.shape[0] >= S
    if T % 8 == 0:
        pos_arr = pos_table                          # no wrapper-side slice/copy
    else:
        pos_arr = pos_table[:S]                      # ragged fallback (T == S)
    grid_spec = pltpu.PrefetchScalarGridSpec(
        num_scalar_prefetch=1,
        grid=(n_sblk, B),
        in_specs=[
            pl.BlockSpec(memory_space=pl.ANY),       # token table stays in HBM
            pl.BlockSpec((T, H), lambda sb, b, ids: (sb, 0)),  # pos rows (resident
                                                     # across the inner batch axis)
        ],
        out_specs=out_spec,
        scratch_shapes=scratch)
    return pl.pallas_call(kernel, out_shape=out_shape, grid_spec=grid_spec,
                          compiler_params=cparams)(ids, token_table, pos_arr)


if __name__ == "__main__":
    # Small, deterministic synthetic setup (mirrors nn.Embedding N(0,1) init).
    B, S, H = 2, 16, 128         # batch, seq, hidden
    V, P = 512, 32               # vocab_size, max_position_embeddings

    key = jax.random.PRNGKey(0)
    k_tok, k_pos, k_ids = jax.random.split(key, 3)
    token_table = jax.random.normal(k_tok, (V, H), dtype=jnp.float32)
    pos_table = jax.random.normal(k_pos, (P, H), dtype=jnp.float32)
    input_ids = jax.random.randint(k_ids, (B, S), 0, V, dtype=jnp.int32)

    out = jax.block_until_ready(
        token_embedding(input_ids, token_table, pos_table, use_rotary=False))

    # Pure-JAX reference (same semantics as the PyTorch forward).
    ref = token_table[input_ids] + pos_table[:S][None, :, :]
    assert out.shape == (B, S, H) and out.dtype == jnp.float32
    assert jnp.allclose(out, ref, atol=1e-5), "Pallas output mismatch vs reference"

    # Also exercise the use_rotary=True path (token embeddings only).
    out_rot = jax.block_until_ready(
        token_embedding(input_ids, token_table, use_rotary=True))
    assert jnp.allclose(out_rot, token_table[input_ids], atol=1e-5)

    print("KERNEL_OK")
</pallas_src>

<mosaic_0001>
module attributes {stable_mosaic.version = 11 : i64} {
  func.func @kernel(%arg0: i32, %arg1: i32, %arg2: memref<32xi32, #tpu.memory_space<smem>>, %arg3: memref<512x128xf32, #tpu.memory_space<any>>, %arg4: memref<16x128xf32, #tpu.memory_space<vmem>>, %arg5: memref<1x16x128xf32, #tpu.memory_space<vmem>>, %arg6: memref<16x128xf32, #tpu.memory_space<vmem>>, %arg7: memref<2x!tpu.dma_semaphore, #tpu.memory_space<semaphore_mem>>) attributes {dimension_semantics = [#tpu.dimension_semantics<parallel>, #tpu.dimension_semantics<parallel>], iteration_bounds = array<i64: 1, 2>, scalar_prefetch = 1 : i64, scratch_operands = 2 : i64, tpu.core_type = #tpu.core_type<tc>, window_params = [{}, {transform_indices = @transform_1, window_bounds = array<i64: 16, 128>}, {transform_indices = @transform_2, window_bounds = array<i64: 1, 16, 128>}]} {
    %c16_i32 = arith.constant 16 : i32
    %0 = arith.muli %arg1, %c16_i32 : i32
    %c16_i32_0 = arith.constant 16 : i32
    %1 = arith.muli %arg0, %c16_i32_0 : i32
    %2 = arith.addi %0, %1 : i32
    %c0_i32 = arith.constant 0 : i32
    %3 = arith.addi %2, %c0_i32 : i32
    %c0_i32_1 = arith.constant 0 : i32
    %4 = arith.addi %3, %c0_i32_1 : i32
    %5 = arith.index_cast %4 : i32 to index
    %6 = memref.load %arg2[%5] : memref<32xi32, #tpu.memory_space<smem>>
    %c0_i32_2 = arith.constant 0 : i32
    %7 = arith.maxsi %6, %c0_i32_2 : i32
    %c511_i32 = arith.constant 511 : i32
    %8 = arith.minsi %7, %c511_i32 : i32
    %c0_i32_3 = arith.constant 0 : i32
    %c0_i32_4 = arith.constant 0 : i32
    %9 = tpu.memref_slice %arg3[%8, %c0_i32_4] : memref<512x128xf32, #tpu.memory_space<any>> -> memref<1x128xf32, #tpu.memory_space<any>>
    %c0_i32_5 = arith.constant 0 : i32
    %c0_i32_6 = arith.constant 0 : i32
    %10 = tpu.memref_slice %arg6[%c0_i32_5, %c0_i32_6] : memref<16x128xf32, #tpu.memory_space<vmem>> -> memref<1x128xf32, #tpu.memory_space<vmem>>
    %11 = tpu.memref_slice %arg7[%c0_i32_3] : memref<2x!tpu.dma_semaphore, #tpu.memory_space<semaphore_mem>> -> memref<1x!tpu.dma_semaphore, #tpu.memory_space<semaphore_mem>>
    %12 = tpu.memref_squeeze %11 : memref<1x!tpu.dma_semaphore, #tpu.memory_space<semaphore_mem>> -> memref<!tpu.dma_semaphore, #tpu.memory_space<semaphore_mem>>
    tpu.enqueue_dma source(%9 : memref<1x128xf32, #tpu.memory_space<any>>) target(%10 : memref<1x128xf32, #tpu.memory_space<vmem>>) target_semaphore(%12 : memref<!tpu.dma_semaphore, #tpu.memory_space<semaphore_mem>>)
    %c1_i32 = arith.constant 1 : i32
    %13 = arith.addi %3, %c1_i32 : i32
    %14 = arith.index_cast %13 : i32 to index
    %15 = memref.load %arg2[%14] : memref<32xi32, #tpu.memory_space<smem>>
    %c0_i32_7 = arith.constant 0 : i32
    %16 = arith.maxsi %15, %c0_i32_7 : i32
    %c511_i32_8 = arith.constant 511 : i32
    %17 = arith.minsi %16, %c511_i32_8 : i32
    %c0_i32_9 = arith.constant 0 : i32
    %c0_i32_10 = arith.constant 0 : i32
    %18 = tpu.memref_slice %arg3[%17, %c0_i32_10] : memref<512x128xf32, #tpu.memory_space<any>> -> memref<1x128xf32, #tpu.memory_space<any>>
    %c1_i32_11 = arith.constant 1 : i32
    %c0_i32_12 = arith.constant 0 : i32
    %19 = tpu.memref_slice %arg6[%c1_i32_11, %c0_i32_12] : memref<16x128xf32, #tpu.memory_space<vmem>> -> memref<1x128xf32, #tpu.memory_space<vmem>>
    %20 = tpu.memref_slice %arg7[%c0_i32_9] : memref<2x!tpu.dma_semaphore, #tpu.memory_space<semaphore_mem>> -> memref<1x!tpu.dma_semaphore, #tpu.memory_space<semaphore_mem>>
    %21 = tpu.memref_squeeze %20 : memref<1x!tpu.dma_semaphore, #tpu.memory_space<semaphore_mem>> -> memref<!tpu.dma_semaphore, #tpu.memory_space<semaphore_mem>>
    tpu.enqueue_dma source(%18 : memref<1x128xf32, #tpu.memory_space<any>>) target(%19 : memref<1x128xf32, #tpu.memory_space<vmem>>) target_semaphore(%21 : memref<!tpu.dma_semaphore, #tpu.memory_space<semaphore_mem>>)
    %c2_i32 = arith.constant 2 : i32
    %22 = arith.addi %3, %c2_i32 : i32
    %23 = arith.index_cast %22 : i32 to index
    %24 = memref.load %arg2[%23] : memref<32xi32, #tpu.memory_space<smem>>
    %c0_i32_13 = arith.constant 0 : i32
    %25 = arith.maxsi %24, %c0_i32_13 : i32
    %c511_i32_14 = arith.constant 511 : i32
    %26 = arith.minsi %25, %c511_i32_14 : i32
    %c0_i32_15 = arith.constant 0 : i32
    %c0_i32_16 = arith.constant 0 : i32
    %27 = tpu.memref_slice %arg3[%26, %c0_i32_16] : memref<512x128xf32, #tpu.memory_space<any>> -> memref<1x128xf32, #tpu.memory_space<any>>
    %c2_i32_17 = arith.constant 2 : i32
    %c0_i32_18 = arith.constant 0 : i32
    %28 = tpu.memref_slice %arg6[%c2_i32_17, %c0_i32_18] : memref<16x128xf32, #tpu.memory_space<vmem>> -> memref<1x128xf32, #tpu.memory_space<vmem>>
    %29 = tpu.memref_slice %arg7[%c0_i32_15] : memref<2x!tpu.dma_semaphore, #tpu.memory_space<semaphore_mem>> -> memref<1x!tpu.dma_semaphore, #tpu.memory_space<semaphore_mem>>
    %30 = tpu.memref_squeeze %29 : memref<1x!tpu.dma_semaphore, #tpu.memory_space<semaphore_mem>> -> memref<!tpu.dma_semaphore, #tpu.memory_space<semaphore_mem>>
    tpu.enqueue_dma source(%27 : memref<1x128xf32, #tpu.memory_space<any>>) target(%28 : memref<1x128xf32, #tpu.memory_space<vmem>>) target_semaphore(%30 : memref<!tpu.dma_semaphore, #tpu.memory_space<semaphore_mem>>)
    %c3_i32 = arith.constant 3 : i32
    %31 = arith.addi %3, %c3_i32 : i32
    %32 = arith.index_cast %31 : i32 to index
    %33 = memref.load %arg2[%32] : memref<32xi32, #tpu.memory_space<smem>>
    %c0_i32_19 = arith.constant 0 : i32
    %34 = arith.maxsi %33, %c0_i32_19 : i32
    %c511_i32_20 = arith.constant 511 : i32
    %35 = arith.minsi %34, %c511_i32_20 : i32
    %c0_i32_21 = arith.constant 0 : i32
    %c0_i32_22 = arith.constant 0 : i32
    %36 = tpu.memref_slice %arg3[%35, %c0_i32_22] : memref<512x128xf32, #tpu.memory_space<any>> -> memref<1x128xf32, #tpu.memory_space<any>>
    %c3_i32_23 = arith.constant 3 : i32
    %c0_i32_24 = arith.constant 0 : i32
    %37 = tpu.memref_slice %arg6[%c3_i32_23, %c0_i32_24] : memref<16x128xf32, #tpu.memory_space<vmem>> -> memref<1x128xf32, #tpu.memory_space<vmem>>
    %38 = tpu.memref_slice %arg7[%c0_i32_21] : memref<2x!tpu.dma_semaphore, #tpu.memory_space<semaphore_mem>> -> memref<1x!tpu.dma_semaphore, #tpu.memory_space<semaphore_mem>>
    %39 = tpu.memref_squeeze %38 : memref<1x!tpu.dma_semaphore, #tpu.memory_space<semaphore_mem>> -> memref<!tpu.dma_semaphore, #tpu.memory_space<semaphore_mem>>
    tpu.enqueue_dma source(%36 : memref<1x128xf32, #tpu.memory_space<any>>) target(%37 : memref<1x128xf32, #tpu.memory_space<vmem>>) target_semaphore(%39 : memref<!tpu.dma_semaphore, #tpu.memory_space<semaphore_mem>>)
    %c4_i32 = arith.constant 4 : i32
    %40 = arith.addi %3, %c4_i32 : i32
    %41 = arith.index_cast %40 : i32 to index
    %42 = memref.load %arg2[%41] : memref<32xi32, #tpu.memory_space<smem>>
    %c0_i32_25 = arith.constant 0 : i32
    %43 = arith.maxsi %42, %c0_i32_25 : i32
    %c511_i32_26 = arith.constant 511 : i32
    %44 = arith.minsi %43, %c511_i32_26 : i32
    %c0_i32_27 = arith.constant 0 : i32
    %c0_i32_28 = arith.constant 0 : i32
    %45 = tpu.memref_slice %arg3[%44, %c0_i32_28] : memref<512x128xf32, #tpu.memory_space<any>> -> memref<1x128xf32, #tpu.memory_space<any>>
    %c4_i32_29 = arith.constant 4 : i32
    %c0_i32_30 = arith.constant 0 : i32
    %46 = tpu.memref_slice %arg6[%c4_i32_29, %c0_i32_30] : memref<16x128xf32, #tpu.memory_space<vmem>> -> memref<1x128xf32, #tpu.memory_space<vmem>>
    %47 = tpu.memref_slice %arg7[%c0_i32_27] : memref<2x!tpu.dma_semaphore, #tpu.memory_space<semaphore_mem>> -> memref<1x!tpu.dma_semaphore, #tpu.memory_space<semaphore_mem>>
    %48 = tpu.memref_squeeze %47 : memref<1x!tpu.dma_semaphore, #tpu.memory_space<semaphore_mem>> -> memref<!tpu.dma_semaphore, #tpu.memory_space<semaphore_mem>>
    tpu.enqueue_dma source(%45 : memref<1x128xf32, #tpu.memory_space<any>>) target(%46 : memref<1x128xf32, #tpu.memory_space<vmem>>) target_semaphore(%48 : memref<!tpu.dma_semaphore, #tpu.memory_space<semaphore_mem>>)
    %c5_i32 = arith.constant 5 : i32
    %49 = arith.addi %3, %c5_i32 : i32
    %50 = arith.index_cast %49 : i32 to index
    %51 = memref.load %arg2[%50] : memref<32xi32, #tpu.memory_space<smem>>
    %c0_i32_31 = arith.constant 0 : i32
    %52 = arith.maxsi %51, %c0_i32_31 : i32
    %c511_i32_32 = arith.constant 511 : i32
    %53 = arith.minsi %52, %c511_i32_32 : i32
    %c0_i32_33 = arith.constant 0 : i32
    %c0_i32_34 = arith.constant 0 : i32
    %54 = tpu.memref_slice %arg3[%53, %c0_i32_34] : memref<512x128xf32, #tpu.memory_space<any>> -> memref<1x128xf32, #tpu.memory_space<any>>
    %c5_i32_35 = arith.constant 5 : i32
    %c0_i32_36 = arith.constant 0 : i32
    %55 = tpu.memref_slice %arg6[%c5_i32_35, %c0_i32_36] : memref<16x128xf32, #tpu.memory_space<vmem>> -> memref<1x128xf32, #tpu.memory_space<vmem>>
    %56 = tpu.memref_slice %arg7[%c0_i32_33] : memref<2x!tpu.dma_semaphore, #tpu.memory_space<semaphore_mem>> -> memref<1x!tpu.dma_semaphore, #tpu.memory_space<semaphore_mem>>
    %57 = tpu.memref_squeeze %56 : memref<1x!tpu.dma_semaphore, #tpu.memory_space<semaphore_mem>> -> memref<!tpu.dma_semaphore, #tpu.memory_space<semaphore_mem>>
    tpu.enqueue_dma source(%54 : memref<1x128xf32, #tpu.memory_space<any>>) target(%55 : memref<1x128xf32, #tpu.memory_space<vmem>>) target_semaphore(%57 : memref<!tpu.dma_semaphore, #tpu.memory_space<semaphore_mem>>)
    %c6_i32 = arith.constant 6 : i32
    %58 = arith.addi %3, %c6_i32 : i32
    %59 = arith.index_cast %58 : i32 to index
    %60 = memref.load %arg2[%59] : memref<32xi32, #tpu.memory_space<smem>>
    %c0_i32_37 = arith.constant 0 : i32
    %61 = arith.maxsi %60, %c0_i32_37 : i32
    %c511_i32_38 = arith.constant 511 : i32
    %62 = arith.minsi %61, %c511_i32_38 : i32
    %c0_i32_39 = arith.constant 0 : i32
    %c0_i32_40 = arith.constant 0 : i32
    %63 = tpu.memref_slice %arg3[%62, %c0_i32_40] : memref<512x128xf32, #tpu.memory_space<any>> -> memref<1x128xf32, #tpu.memory_space<any>>
    %c6_i32_41 = arith.constant 6 : i32
    %c0_i32_42 = arith.constant 0 : i32
    %64 = tpu.memref_slice %arg6[%c6_i32_41, %c0_i32_42] : memref<16x128xf32, #tpu.memory_space<vmem>> -> memref<1x128xf32, #tpu.memory_space<vmem>>
    %65 = tpu.memref_slice %arg7[%c0_i32_39] : memref<2x!tpu.dma_semaphore, #tpu.memory_space<semaphore_mem>> -> memref<1x!tpu.dma_semaphore, #tpu.memory_space<semaphore_mem>>
    %66 = tpu.memref_squeeze %65 : memref<1x!tpu.dma_semaphore, #tpu.memory_space<semaphore_mem>> -> memref<!tpu.dma_semaphore, #tpu.memory_space<semaphore_mem>>
    tpu.enqueue_dma source(%63 : memref<1x128xf32, #tpu.memory_space<any>>) target(%64 : memref<1x128xf32, #tpu.memory_space<vmem>>) target_semaphore(%66 : memref<!tpu.dma_semaphore, #tpu.memory_space<semaphore_mem>>)
    %c7_i32 = arith.constant 7 : i32
    %67 = arith.addi %3, %c7_i32 : i32
    %68 = arith.index_cast %67 : i32 to index
    %69 = memref.load %arg2[%68] : memref<32xi32, #tpu.memory_space<smem>>
    %c0_i32_43 = arith.constant 0 : i32
    %70 = arith.maxsi %69, %c0_i32_43 : i32
    %c511_i32_44 = arith.constant 511 : i32
    %71 = arith.minsi %70, %c511_i32_44 : i32
    %c0_i32_45 = arith.constant 0 : i32
    %c0_i32_46 = arith.constant 0 : i32
    %72 = tpu.memref_slice %arg3[%71, %c0_i32_46] : memref<512x128xf32, #tpu.memory_space<any>> -> memref<1x128xf32, #tpu.memory_space<any>>
    %c7_i32_47 = arith.constant 7 : i32
    %c0_i32_48 = arith.constant 0 : i32
    %73 = tpu.memref_slice %arg6[%c7_i32_47, %c0_i32_48] : memref<16x128xf32, #tpu.memory_space<vmem>> -> memref<1x128xf32, #tpu.memory_space<vmem>>
    %74 = tpu.memref_slice %arg7[%c0_i32_45] : memref<2x!tpu.dma_semaphore, #tpu.memory_space<semaphore_mem>> -> memref<1x!tpu.dma_semaphore, #tpu.memory_space<semaphore_mem>>
    %75 = tpu.memref_squeeze %74 : memref<1x!tpu.dma_semaphore, #tpu.memory_space<semaphore_mem>> -> memref<!tpu.dma_semaphore, #tpu.memory_space<semaphore_mem>>
    tpu.enqueue_dma source(%72 : memref<1x128xf32, #tpu.memory_space<any>>) target(%73 : memref<1x128xf32, #tpu.memory_space<vmem>>) target_semaphore(%75 : memref<!tpu.dma_semaphore, #tpu.memory_space<semaphore_mem>>)
    %c0_i32_49 = arith.constant 0 : i32
    %c2_i32_50 = arith.constant 2 : i32
    %76 = arith.addi %c0_i32_49, %c2_i32_50 : i32
    %c1_i32_51 = arith.constant 1 : i32
    scf.for %arg8 = %c0_i32_49 to %76 step %c1_i32_51  : i32 {
      %c1_i32_53 = arith.constant 1 : i32
      %77 = arith.muli %arg8, %c1_i32_53 : i32
      %c0_i32_54 = arith.constant 0 : i32
      %78 = arith.addi %c0_i32_54, %77 : i32
      %c1_i32_55 = arith.constant 1 : i32
      %79 = arith.addi %78, %c1_i32_55 : i32
      %c2_i32_56 = arith.constant 2 : i32
      %80 = arith.cmpi slt, %79, %c2_i32_56 : i32
      %81 = arith.extui %80 : i1 to i32
      %c0_i32_57 = arith.constant 0 : i32
      %82 = arith.cmpi ne, %81, %c0_i32_57 : i32
      scf.if %82 {
        %c1_i32_94 = arith.constant 1 : i32
        %127 = arith.addi %78, %c1_i32_94 : i32
        %c8_i32_95 = arith.constant 8 : i32
        %128 = arith.muli %127, %c8_i32_95 : i32
        %129 = arith.addi %2, %128 : i32
        %c8_i32_96 = arith.constant 8 : i32
        %130 = arith.muli %127, %c8_i32_96 : i32
        %c1_i32_97 = arith.constant 1 : i32
        %131 = arith.andi %127, %c1_i32_97 : i32
        %c0_i32_98 = arith.constant 0 : i32
        %132 = arith.addi %129, %c0_i32_98 : i32
        %133 = arith.index_cast %132 : i32 to index
        %134 = memref.load %arg2[%133] : memref<32xi32, #tpu.memory_space<smem>>
        %c0_i32_99 = arith.constant 0 : i32
        %135 = arith.maxsi %134, %c0_i32_99 : i32
        %c511_i32_100 = arith.constant 511 : i32
        %136 = arith.minsi %135, %c511_i32_100 : i32
        %c0_i32_101 = arith.constant 0 : i32
        %137 = arith.addi %130, %c0_i32_101 : i32
        %c0_i32_102 = arith.constant 0 : i32
        %138 = tpu.memref_slice %arg3[%136, %c0_i32_102] : memref<512x128xf32, #tpu.memory_space<any>> -> memref<1x128xf32, #tpu.memory_space<any>>
        %c0_i32_103 = arith.constant 0 : i32
        %139 = tpu.memref_slice %arg6[%137, %c0_i32_103] : memref<16x128xf32, #tpu.memory_space<vmem>> -> memref<1x128xf32, #tpu.memory_space<vmem>>
        %140 = tpu.memref_slice %arg7[%131] : memref<2x!tpu.dma_semaphore, #tpu.memory_space<semaphore_mem>> -> memref<1x!tpu.dma_semaphore, #tpu.memory_space<semaphore_mem>>
        %141 = tpu.memref_squeeze %140 : memref<1x!tpu.dma_semaphore, #tpu.memory_space<semaphore_mem>> -> memref<!tpu.dma_semaphore, #tpu.memory_space<semaphore_mem>>
        tpu.enqueue_dma source(%138 : memref<1x128xf32, #tpu.memory_space<any>>) target(%139 : memref<1x128xf32, #tpu.memory_space<vmem>>) target_semaphore(%141 : memref<!tpu.dma_semaphore, #tpu.memory_space<semaphore_mem>>)
        %c1_i32_104 = arith.constant 1 : i32
        %142 = arith.addi %129, %c1_i32_104 : i32
        %143 = arith.index_cast %142 : i32 to index
        %144 = memref.load %arg2[%143] : memref<32xi32, #tpu.memory_space<smem>>
        %c0_i32_105 = arith.constant 0 : i32
        %145 = arith.maxsi %144, %c0_i32_105 : i32
        %c511_i32_106 = arith.constant 511 : i32
        %146 = arith.minsi %145, %c511_i32_106 : i32
        %c1_i32_107 = arith.constant 1 : i32
        %147 = arith.addi %130, %c1_i32_107 : i32
        %c0_i32_108 = arith.constant 0 : i32
        %148 = tpu.memref_slice %arg3[%146, %c0_i32_108] : memref<512x128xf32, #tpu.memory_space<any>> -> memref<1x128xf32, #tpu.memory_space<any>>
        %c0_i32_109 = arith.constant 0 : i32
        %149 = tpu.memref_slice %arg6[%147, %c0_i32_109] : memref<16x128xf32, #tpu.memory_space<vmem>> -> memref<1x128xf32, #tpu.memory_space<vmem>>
        %150 = tpu.memref_slice %arg7[%131] : memref<2x!tpu.dma_semaphore, #tpu.memory_space<semaphore_mem>> -> memref<1x!tpu.dma_semaphore, #tpu.memory_space<semaphore_mem>>
        %151 = tpu.memref_squeeze %150 : memref<1x!tpu.dma_semaphore, #tpu.memory_space<semaphore_mem>> -> memref<!tpu.dma_semaphore, #tpu.memory_space<semaphore_mem>>
        tpu.enqueue_dma source(%148 : memref<1x128xf32, #tpu.memory_space<any>>) target(%149 : memref<1x128xf32, #tpu.memory_space<vmem>>) target_semaphore(%151 : memref<!tpu.dma_semaphore, #tpu.memory_space<semaphore_mem>>)
        %c2_i32_110 = arith.constant 2 : i32
        %152 = arith.addi %129, %c2_i32_110 : i32
        %153 = arith.index_cast %152 : i32 to index
        %154 = memref.load %arg2[%153] : memref<32xi32, #tpu.memory_space<smem>>
        %c0_i32_111 = arith.constant 0 : i32
        %155 = arith.maxsi %154, %c0_i32_111 : i32
        %c511_i32_112 = arith.constant 511 : i32
        %156 = arith.minsi %155, %c511_i32_112 : i32
        %c2_i32_113 = arith.constant 2 : i32
        %157 = arith.addi %130, %c2_i32_113 : i32
        %c0_i32_114 = arith.constant 0 : i32
        %158 = tpu.memref_slice %arg3[%156, %c0_i32_114] : memref<512x128xf32, #tpu.memory_space<any>> -> memref<1x128xf32, #tpu.memory_space<any>>
        %c0_i32_115 = arith.constant 0 : i32
        %159 = tpu.memref_slice %arg6[%157, %c0_i32_115] : memref<16x128xf32, #tpu.memory_space<vmem>> -> memref<1x128xf32, #tpu.memory_space<vmem>>
        %160 = tpu.memref_slice %arg7[%131] : memref<2x!tpu.dma_semaphore, #tpu.memory_space<semaphore_mem>> -> memref<1x!tpu.dma_semaphore, #tpu.memory_space<semaphore_mem>>
        %161 = tpu.memref_squeeze %160 : memref<1x!tpu.dma_semaphore, #tpu.memory_space<semaphore_mem>> -> memref<!tpu.dma_semaphore, #tpu.memory_space<semaphore_mem>>
        tpu.enqueue_dma source(%158 : memref<1x128xf32, #tpu.memory_space<any>>) target(%159 : memref<1x128xf32, #tpu.memory_space<vmem>>) target_semaphore(%161 : memref<!tpu.dma_semaphore, #tpu.memory_space<semaphore_mem>>)
        %c3_i32_116 = arith.constant 3 : i32
        %162 = arith.addi %129, %c3_i32_116 : i32
        %163 = arith.index_cast %162 : i32 to index
        %164 = memref.load %arg2[%163] : memref<32xi32, #tpu.memory_space<smem>>
        %c0_i32_117 = arith.constant 0 : i32
        %165 = arith.maxsi %164, %c0_i32_117 : i32
        %c511_i32_118 = arith.constant 511 : i32
        %166 = arith.minsi %165, %c511_i32_118 : i32
        %c3_i32_119 = arith.constant 3 : i32
        %167 = arith.addi %130, %c3_i32_119 : i32
        %c0_i32_120 = arith.constant 0 : i32
        %168 = tpu.memref_slice %arg3[%166, %c0_i32_120] : memref<512x128xf32, #tpu.memory_space<any>> -> memref<1x128xf32, #tpu.memory_space<any>>
        %c0_i32_121 = arith.constant 0 : i32
        %169 = tpu.memref_slice %arg6[%167, %c0_i32_121] : memref<16x128xf32, #tpu.memory_space<vmem>> -> memref<1x128xf32, #tpu.memory_space<vmem>>
        %170 = tpu.memref_slice %arg7[%131] : memref<2x!tpu.dma_semaphore, #tpu.memory_space<semaphore_mem>> -> memref<1x!tpu.dma_semaphore, #tpu.memory_space<semaphore_mem>>
        %171 = tpu.memref_squeeze %170 : memref<1x!tpu.dma_semaphore, #tpu.memory_space<semaphore_mem>> -> memref<!tpu.dma_semaphore, #tpu.memory_space<semaphore_mem>>
        tpu.enqueue_dma source(%168 : memref<1x128xf32, #tpu.memory_space<any>>) target(%169 : memref<1x128xf32, #tpu.memory_space<vmem>>) target_semaphore(%171 : memref<!tpu.dma_semaphore, #tpu.memory_space<semaphore_mem>>)
        %c4_i32_122 = arith.constant 4 : i32
        %172 = arith.addi %129, %c4_i32_122 : i32
        %173 = arith.index_cast %172 : i32 to index
        %174 = memref.load %arg2[%173] : memref<32xi32, #tpu.memory_space<smem>>
        %c0_i32_123 = arith.constant 0 : i32
        %175 = arith.maxsi %174, %c0_i32_123 : i32
        %c511_i32_124 = arith.constant 511 : i32
        %176 = arith.minsi %175, %c511_i32_124 : i32
        %c4_i32_125 = arith.constant 4 : i32
        %177 = arith.addi %130, %c4_i32_125 : i32
        %c0_i32_126 = arith.constant 0 : i32
        %178 = tpu.memref_slice %arg3[%176, %c0_i32_126] : memref<512x128xf32, #tpu.memory_space<any>> -> memref<1x128xf32, #tpu.memory_space<any>>
        %c0_i32_127 = arith.constant 0 : i32
        %179 = tpu.memref_slice %arg6[%177, %c0_i32_127] : memref<16x128xf32, #tpu.memory_space<vmem>> -> memref<1x128xf32, #tpu.memory_space<vmem>>
        %180 = tpu.memref_slice %arg7[%131] : memref<2x!tpu.dma_semaphore, #tpu.memory_space<semaphore_mem>> -> memref<1x!tpu.dma_semaphore, #tpu.memory_space<semaphore_mem>>
        %181 = tpu.memref_squeeze %180 : memref<1x!tpu.dma_semaphore, #tpu.memory_space<semaphore_mem>> -> memref<!tpu.dma_semaphore, #tpu.memory_space<semaphore_mem>>
        tpu.enqueue_dma source(%178 : memref<1x128xf32, #tpu.memory_space<any>>) target(%179 : memref<1x128xf32, #tpu.memory_space<vmem>>) target_semaphore(%181 : memref<!tpu.dma_semaphore, #tpu.memory_space<semaphore_mem>>)
        %c5_i32_128 = arith.constant 5 : i32
        %182 = arith.addi %129, %c5_i32_128 : i32
        %183 = arith.index_cast %182 : i32 to index
        %184 = memref.load %arg2[%183] : memref<32xi32, #tpu.memory_space<smem>>
        %c0_i32_129 = arith.constant 0 : i32
        %185 = arith.maxsi %184, %c0_i32_129 : i32
        %c511_i32_130 = arith.constant 511 : i32
        %186 = arith.minsi %185, %c511_i32_130 : i32
        %c5_i32_131 = arith.constant 5 : i32
        %187 = arith.addi %130, %c5_i32_131 : i32
        %c0_i32_132 = arith.constant 0 : i32
        %188 = tpu.memref_slice %arg3[%186, %c0_i32_132] : memref<512x128xf32, #tpu.memory_space<any>> -> memref<1x128xf32, #tpu.memory_space<any>>
        %c0_i32_133 = arith.constant 0 : i32
        %189 = tpu.memref_slice %arg6[%187, %c0_i32_133] : memref<16x128xf32, #tpu.memory_space<vmem>> -> memref<1x128xf32, #tpu.memory_space<vmem>>
        %190 = tpu.memref_slice %arg7[%131] : memref<2x!tpu.dma_semaphore, #tpu.memory_space<semaphore_mem>> -> memref<1x!tpu.dma_semaphore, #tpu.memory_space<semaphore_mem>>
        %191 = tpu.memref_squeeze %190 : memref<1x!tpu.dma_semaphore, #tpu.memory_space<semaphore_mem>> -> memref<!tpu.dma_semaphore, #tpu.memory_space<semaphore_mem>>
        tpu.enqueue_dma source(%188 : memref<1x128xf32, #tpu.memory_space<any>>) target(%189 : memref<1x128xf32, #tpu.memory_space<vmem>>) target_semaphore(%191 : memref<!tpu.dma_semaphore, #tpu.memory_space<semaphore_mem>>)
        %c6_i32_134 = arith.constant 6 : i32
        %192 = arith.addi %129, %c6_i32_134 : i32
        %193 = arith.index_cast %192 : i32 to index
        %194 = memref.load %arg2[%193] : memref<32xi32, #tpu.memory_space<smem>>
        %c0_i32_135 = arith.constant 0 : i32
        %195 = arith.maxsi %194, %c0_i32_135 : i32
        %c511_i32_136 = arith.constant 511 : i32
        %196 = arith.minsi %195, %c511_i32_136 : i32
        %c6_i32_137 = arith.constant 6 : i32
        %197 = arith.addi %130, %c6_i32_137 : i32
        %c0_i32_138 = arith.constant 0 : i32
        %198 = tpu.memref_slice %arg3[%196, %c0_i32_138] : memref<512x128xf32, #tpu.memory_space<any>> -> memref<1x128xf32, #tpu.memory_space<any>>
        %c0_i32_139 = arith.constant 0 : i32
        %199 = tpu.memref_slice %arg6[%197, %c0_i32_139] : memref<16x128xf32, #tpu.memory_space<vmem>> -> memref<1x128xf32, #tpu.memory_space<vmem>>
        %200 = tpu.memref_slice %arg7[%131] : memref<2x!tpu.dma_semaphore, #tpu.memory_space<semaphore_mem>> -> memref<1x!tpu.dma_semaphore, #tpu.memory_space<semaphore_mem>>
        %201 = tpu.memref_squeeze %200 : memref<1x!tpu.dma_semaphore, #tpu.memory_space<semaphore_mem>> -> memref<!tpu.dma_semaphore, #tpu.memory_space<semaphore_mem>>
        tpu.enqueue_dma source(%198 : memref<1x128xf32, #tpu.memory_space<any>>) target(%199 : memref<1x128xf32, #tpu.memory_space<vmem>>) target_semaphore(%201 : memref<!tpu.dma_semaphore, #tpu.memory_space<semaphore_mem>>)
        %c7_i32_140 = arith.constant 7 : i32
        %202 = arith.addi %129, %c7_i32_140 : i32
        %203 = arith.index_cast %202 : i32 to index
        %204 = memref.load %arg2[%203] : memref<32xi32, #tpu.memory_space<smem>>
        %c0_i32_141 = arith.constant 0 : i32
        %205 = arith.maxsi %204, %c0_i32_141 : i32
        %c511_i32_142 = arith.constant 511 : i32
        %206 = arith.minsi %205, %c511_i32_142 : i32
        %c7_i32_143 = arith.constant 7 : i32
        %207 = arith.addi %130, %c7_i32_143 : i32
        %c0_i32_144 = arith.constant 0 : i32
        %208 = tpu.memref_slice %arg3[%206, %c0_i32_144] : memref<512x128xf32, #tpu.memory_space<any>> -> memref<1x128xf32, #tpu.memory_space<any>>
        %c0_i32_145 = arith.constant 0 : i32
        %209 = tpu.memref_slice %arg6[%207, %c0_i32_145] : memref<16x128xf32, #tpu.memory_space<vmem>> -> memref<1x128xf32, #tpu.memory_space<vmem>>
        %210 = tpu.memref_slice %arg7[%131] : memref<2x!tpu.dma_semaphore, #tpu.memory_space<semaphore_mem>> -> memref<1x!tpu.dma_semaphore, #tpu.memory_space<semaphore_mem>>
        %211 = tpu.memref_squeeze %210 : memref<1x!tpu.dma_semaphore, #tpu.memory_space<semaphore_mem>> -> memref<!tpu.dma_semaphore, #tpu.memory_space<semaphore_mem>>
        tpu.enqueue_dma source(%208 : memref<1x128xf32, #tpu.memory_space<any>>) target(%209 : memref<1x128xf32, #tpu.memory_space<vmem>>) target_semaphore(%211 : memref<!tpu.dma_semaphore, #tpu.memory_space<semaphore_mem>>)
      } else {
      }
      %c1_i32_58 = arith.constant 1 : i32
      %83 = arith.andi %78, %c1_i32_58 : i32
      %c0_i32_59 = arith.constant 0 : i32
      %c0_i32_60 = arith.constant 0 : i32
      %84 = tpu.memref_slice %arg3[%c0_i32_59, %c0_i32_60] : memref<512x128xf32, #tpu.memory_space<any>> -> memref<1x128xf32, #tpu.memory_space<any>>
      %c0_i32_61 = arith.constant 0 : i32
      %c0_i32_62 = arith.constant 0 : i32
      %85 = tpu.memref_slice %arg6[%c0_i32_61, %c0_i32_62] : memref<16x128xf32, #tpu.memory_space<vmem>> -> memref<1x128xf32, #tpu.memory_space<vmem>>
      %86 = tpu.memref_slice %arg7[%83] : memref<2x!tpu.dma_semaphore, #tpu.memory_space<semaphore_mem>> -> memref<1x!tpu.dma_semaphore, #tpu.memory_space<semaphore_mem>>
      %87 = tpu.memref_squeeze %86 : memref<1x!tpu.dma_semaphore, #tpu.memory_space<semaphore_mem>> -> memref<!tpu.dma_semaphore, #tpu.memory_space<semaphore_mem>>
      tpu.wait_dma2 semaphore(%87 : memref<!tpu.dma_semaphore, #tpu.memory_space<semaphore_mem>>) src(%84 : memref<1x128xf32, #tpu.memory_space<any>>) dst(%85 : memref<1x128xf32, #tpu.memory_space<vmem>>)
      %c0_i32_63 = arith.constant 0 : i32
      %c0_i32_64 = arith.constant 0 : i32
      %88 = tpu.memref_slice %arg3[%c0_i32_63, %c0_i32_64] : memref<512x128xf32, #tpu.memory_space<any>> -> memref<1x128xf32, #tpu.memory_space<any>>
      %c0_i32_65 = arith.constant 0 : i32
      %c0_i32_66 = arith.constant 0 : i32
      %89 = tpu.memref_slice %arg6[%c0_i32_65, %c0_i32_66] : memref<16x128xf32, #tpu.memory_space<vmem>> -> memref<1x128xf32, #tpu.memory_space<vmem>>
      %90 = tpu.memref_slice %arg7[%83] : memref<2x!tpu.dma_semaphore, #tpu.memory_space<semaphore_mem>> -> memref<1x!tpu.dma_semaphore, #tpu.memory_space<semaphore_mem>>
      %91 = tpu.memref_squeeze %90 : memref<1x!tpu.dma_semaphore, #tpu.memory_space<semaphore_mem>> -> memref<!tpu.dma_semaphore, #tpu.memory_space<semaphore_mem>>
      tpu.wait_dma2 semaphore(%91 : memref<!tpu.dma_semaphore, #tpu.memory_space<semaphore_mem>>) src(%88 : memref<1x128xf32, #tpu.memory_space<any>>) dst(%89 : memref<1x128xf32, #tpu.memory_space<vmem>>)
      %c0_i32_67 = arith.constant 0 : i32
      %c0_i32_68 = arith.constant 0 : i32
      %92 = tpu.memref_slice %arg3[%c0_i32_67, %c0_i32_68] : memref<512x128xf32, #tpu.memory_space<any>> -> memref<1x128xf32, #tpu.memory_space<any>>
      %c0_i32_69 = arith.constant 0 : i32
      %c0_i32_70 = arith.constant 0 : i32
      %93 = tpu.memref_slice %arg6[%c0_i32_69, %c0_i32_70] : memref<16x128xf32, #tpu.memory_space<vmem>> -> memref<1x128xf32, #tpu.memory_space<vmem>>
      %94 = tpu.memref_slice %arg7[%83] : memref<2x!tpu.dma_semaphore, #tpu.memory_space<semaphore_mem>> -> memref<1x!tpu.dma_semaphore, #tpu.memory_space<semaphore_mem>>
      %95 = tpu.memref_squeeze %94 : memref<1x!tpu.dma_semaphore, #tpu.memory_space<semaphore_mem>> -> memref<!tpu.dma_semaphore, #tpu.memory_space<semaphore_mem>>
      tpu.wait_dma2 semaphore(%95 : memref<!tpu.dma_semaphore, #tpu.memory_space<semaphore_mem>>) src(%92 : memref<1x128xf32, #tpu.memory_space<any>>) dst(%93 : memref<1x128xf32, #tpu.memory_space<vmem>>)
      %c0_i32_71 = arith.constant 0 : i32
      %c0_i32_72 = arith.constant 0 : i32
      %96 = tpu.memref_slice %arg3[%c0_i32_71, %c0_i32_72] : memref<512x128xf32, #tpu.memory_space<any>> -> memref<1x128xf32, #tpu.memory_space<any>>
      %c0_i32_73 = arith.constant 0 : i32
      %c0_i32_74 = arith.constant 0 : i32
      %97 = tpu.memref_slice %arg6[%c0_i32_73, %c0_i32_74] : memref<16x128xf32, #tpu.memory_space<vmem>> -> memref<1x128xf32, #tpu.memory_space<vmem>>
      %98 = tpu.memref_slice %arg7[%83] : memref<2x!tpu.dma_semaphore, #tpu.memory_space<semaphore_mem>> -> memref<1x!tpu.dma_semaphore, #tpu.memory_space<semaphore_mem>>
      %99 = tpu.memref_squeeze %98 : memref<1x!tpu.dma_semaphore, #tpu.memory_space<semaphore_mem>> -> memref<!tpu.dma_semaphore, #tpu.memory_space<semaphore_mem>>
      tpu.wait_dma2 semaphore(%99 : memref<!tpu.dma_semaphore, #tpu.memory_space<semaphore_mem>>) src(%96 : memref<1x128xf32, #tpu.memory_space<any>>) dst(%97 : memref<1x128xf32, #tpu.memory_space<vmem>>)
      %c0_i32_75 = arith.constant 0 : i32
      %c0_i32_76 = arith.constant 0 : i32
      %100 = tpu.memref_slice %arg3[%c0_i32_75, %c0_i32_76] : memref<512x128xf32, #tpu.memory_space<any>> -> memref<1x128xf32, #tpu.memory_space<any>>
      %c0_i32_77 = arith.constant 0 : i32
      %c0_i32_78 = arith.constant 0 : i32
      %101 = tpu.memref_slice %arg6[%c0_i32_77, %c0_i32_78] : memref<16x128xf32, #tpu.memory_space<vmem>> -> memref<1x128xf32, #tpu.memory_space<vmem>>
      %102 = tpu.memref_slice %arg7[%83] : memref<2x!tpu.dma_semaphore, #tpu.memory_space<semaphore_mem>> -> memref<1x!tpu.dma_semaphore, #tpu.memory_space<semaphore_mem>>
      %103 = tpu.memref_squeeze %102 : memref<1x!tpu.dma_semaphore, #tpu.memory_space<semaphore_mem>> -> memref<!tpu.dma_semaphore, #tpu.memory_space<semaphore_mem>>
      tpu.wait_dma2 semaphore(%103 : memref<!tpu.dma_semaphore, #tpu.memory_space<semaphore_mem>>) src(%100 : memref<1x128xf32, #tpu.memory_space<any>>) dst(%101 : memref<1x128xf32, #tpu.memory_space<vmem>>)
      %c0_i32_79 = arith.constant 0 : i32
      %c0_i32_80 = arith.constant 0 : i32
      %104 = tpu.memref_slice %arg3[%c0_i32_79, %c0_i32_80] : memref<512x128xf32, #tpu.memory_space<any>> -> memref<1x128xf32, #tpu.memory_space<any>>
      %c0_i32_81 = arith.constant 0 : i32
      %c0_i32_82 = arith.constant 0 : i32
      %105 = tpu.memref_slice %arg6[%c0_i32_81, %c0_i32_82] : memref<16x128xf32, #tpu.memory_space<vmem>> -> memref<1x128xf32, #tpu.memory_space<vmem>>
      %106 = tpu.memref_slice %arg7[%83] : memref<2x!tpu.dma_semaphore, #tpu.memory_space<semaphore_mem>> -> memref<1x!tpu.dma_semaphore, #tpu.memory_space<semaphore_mem>>
      %107 = tpu.memref_squeeze %106 : memref<1x!tpu.dma_semaphore, #tpu.memory_space<semaphore_mem>> -> memref<!tpu.dma_semaphore, #tpu.memory_space<semaphore_mem>>
      tpu.wait_dma2 semaphore(%107 : memref<!tpu.dma_semaphore, #tpu.memory_space<semaphore_mem>>) src(%104 : memref<1x128xf32, #tpu.memory_space<any>>) dst(%105 : memref<1x128xf32, #tpu.memory_space<vmem>>)
      %c0_i32_83 = arith.constant 0 : i32
      %c0_i32_84 = arith.constant 0 : i32
      %108 = tpu.memref_slice %arg3[%c0_i32_83, %c0_i32_84] : memref<512x128xf32, #tpu.memory_space<any>> -> memref<1x128xf32, #tpu.memory_space<any>>
      %c0_i32_85 = arith.constant 0 : i32
      %c0_i32_86 = arith.constant 0 : i32
      %109 = tpu.memref_slice %arg6[%c0_i32_85, %c0_i32_86] : memref<16x128xf32, #tpu.memory_space<vmem>> -> memref<1x128xf32, #tpu.memory_space<vmem>>
      %110 = tpu.memref_slice %arg7[%83] : memref<2x!tpu.dma_semaphore, #tpu.memory_space<semaphore_mem>> -> memref<1x!tpu.dma_semaphore, #tpu.memory_space<semaphore_mem>>
      %111 = tpu.memref_squeeze %110 : memref<1x!tpu.dma_semaphore, #tpu.memory_space<semaphore_mem>> -> memref<!tpu.dma_semaphore, #tpu.memory_space<semaphore_mem>>
      tpu.wait_dma2 semaphore(%111 : memref<!tpu.dma_semaphore, #tpu.memory_space<semaphore_mem>>) src(%108 : memref<1x128xf32, #tpu.memory_space<any>>) dst(%109 : memref<1x128xf32, #tpu.memory_space<vmem>>)
      %c0_i32_87 = arith.constant 0 : i32
      %c0_i32_88 = arith.constant 0 : i32
      %112 = tpu.memref_slice %arg3[%c0_i32_87, %c0_i32_88] : memref<512x128xf32, #tpu.memory_space<any>> -> memref<1x128xf32, #tpu.memory_space<any>>
      %c0_i32_89 = arith.constant 0 : i32
      %c0_i32_90 = arith.constant 0 : i32
      %113 = tpu.memref_slice %arg6[%c0_i32_89, %c0_i32_90] : memref<16x128xf32, #tpu.memory_space<vmem>> -> memref<1x128xf32, #tpu.memory_space<vmem>>
      %114 = tpu.memref_slice %arg7[%83] : memref<2x!tpu.dma_semaphore, #tpu.memory_space<semaphore_mem>> -> memref<1x!tpu.dma_semaphore, #tpu.memory_space<semaphore_mem>>
      %115 = tpu.memref_squeeze %114 : memref<1x!tpu.dma_semaphore, #tpu.memory_space<semaphore_mem>> -> memref<!tpu.dma_semaphore, #tpu.memory_space<semaphore_mem>>
      tpu.wait_dma2 semaphore(%115 : memref<!tpu.dma_semaphore, #tpu.memory_space<semaphore_mem>>) src(%112 : memref<1x128xf32, #tpu.memory_space<any>>) dst(%113 : memref<1x128xf32, #tpu.memory_space<vmem>>)
      %c8_i32 = arith.constant 8 : i32
      %116 = arith.muli %78, %c8_i32 : i32
      %117 = tpu.assume_multiple %116, 8 : i32
      %118 = arith.index_cast %117 : i32 to index
      %c0 = arith.constant 0 : index
      %119 = vector.load %arg6[%118, %c0] : memref<16x128xf32, #tpu.memory_space<vmem>>, vector<8x128xf32>
      %120 = arith.index_cast %117 : i32 to index
      %c0_91 = arith.constant 0 : index
      %121 = vector.load %arg4[%120, %c0_91] : memref<16x128xf32, #tpu.memory_space<vmem>>, vector<8x128xf32>
      %122 = arith.addf %119, %121 : vector<8x128xf32>
      %c0_92 = arith.constant 0 : index
      %123 = arith.index_cast %117 : i32 to index
      %c0_93 = arith.constant 0 : index
      %124 = vector.load %arg5[%c0_92, %123, %c0_93] : memref<1x16x128xf32, #tpu.memory_space<vmem>>, vector<1x8x128xf32>
      %125 = vector.shape_cast %124 : vector<1x8x128xf32> to vector<8x128xf32>
      %126 = vector.shape_cast %122 : vector<8x128xf32> to vector<1x8x128xf32>
      tpu.vector_store %arg5[%c0_92, %123, %c0_93], %126 {strides = array<i32>} : memref<1x16x128xf32, #tpu.memory_space<vmem>>, vector<1x8x128xf32>,
    }
    %c2_i32_52 = arith.constant 2 : i32
    return
  }
  func.func @transform_1(%arg0: i32, %arg1: i32, %arg2: memref<32xi32, #tpu.memory_space<smem>>) -> (i32, i32) {
    %c0_i32 = arith.constant 0 : i32
    %c0_i32_0 = arith.constant 0 : i32
    return %arg0, %c0_i32 : i32, i32
  }
  func.func @transform_2(%arg0: i32, %arg1: i32, %arg2: memref<32xi32, #tpu.memory_space<smem>>) -> (i32, i32, i32) {
    %c0_i32 = arith.constant 0 : i32
    %c0_i32_0 = arith.constant 0 : i32
    return %arg1, %arg0, %c0_i32 : i32, i32, i32
  }
}

</mosaic_0001>

<bundles_post_ra>
// kernel: tpu_custom_call.1
= control target key start
LH: loop header
LB: loop body
LE: loop exit
PB: predicated region body
PF: predicated region fallthrough
CT: control target
= control target key end

     0   :  { %s2171_s0 = inlined_call_operand.hbm [shape: s32[32], index: 0, kind: input, shape index: {}]   ;;  %s2172_s1 = inlined_call_operand.hbm [shape: f32[512,128], index: 1, kind: input, shape index: {}]   ;;  %s2173_s2 = inlined_call_operand.hbm [shape: f32[32,128], index: 2, kind: input, shape index: {}]   ;;  %s2174_s3 = inlined_call_operand.hbm [shape: f32[2,16,128], index: 3, kind: output, shape index: {}]  }
   0x1   :  { %2188 = sst [smem:[#allocation64_spill]] %s2173_s2  ;;  %s952_s14 = scalar_lea.hbm %s2171_s0, 16 }
   0x2   :  { %p953_p0 = scmp.ne.s32.totalorder %s2171_s0, %s952_s14  ;;  %p956_p1 = scmp.lt.u32.totalorder %s952_s14, %s2171_s0 }
   0x4   :  { %p958_p2 = pnand %p956_p1, %p953_p0 }
   0x6   :  { %961 = shalt.err (!%p958_p2)  }
   0x7   :  { %s1502_s19 = smov [#allocation5]  }
   0x8   :  { %9 = dma.hbm_to_smem %s2171_s0, 16, %s1502_s19, [#allocation4] }
   0x9   :  { %1462 = dma.done.wait [#allocation4], 16 }
   0xa   :  { %1463 = vsyncadd [#allocation4], 4294967280 }
   0xb   :  { %11 = sfence }
   0xc   :  { %12 = vsyncpa [#allocation7], 0 }
   0xd   :  { %13 = vsyncpa [#allocation8], 0 }
   0xe   :  { %15 = vsyncpa [#allocation8 + $0x1], 0  ;;  %s1549_s22 = smov 0   ;;  %s1551_s23 = smov 0  }
   0xf   :  { %s1553_s24 = smov 0   ;;  %s1555_s25 = smov 0  }
  0x10   :  { %s1557_s26 = smov 0   ;;  %s1559_s27 = smov 0  }
  0x11 LB: > { %2189 = sst [smem:[#allocation56_spill]] %s1476_s22  ;;  %s682_s0 = sadd.s32 4294967295, %s1496_s27   ;;  %s1496_s27 = sphi %s1559_s27, %s21_s27   ;;  %s1492_s26 = sphi %s1557_s26, %s2226_s26   ;;  %s1488_s25 = sphi %s1555_s25, %s2225_s25   ;;  %s1484_s24 = sphi %s1553_s24, %s2224_s24   ;;  %s1480_s23 = sphi %s1551_s23, %s2228_s23   ;;  %s1476_s22 = sphi %s1549_s22, %s2227_s22  }
  0x12   : > { %2190 = sst [smem:[#allocation57_spill]] %s1484_s24  ;;  %s683_s28 = sadd.s32 4294967294, %s1496_s27  }
  0x13   : > { %2191 = sst [smem:[#allocation58_spill]] %s1492_s26  ;;  %s30_s29 = sadd.s32 1, %s1492_s26 }
  0x14   : > { %2192 = sst [smem:[#allocation59_spill]] %s1496_s27  ;;  %s68_s30 = sadd.s32 1, %s1484_s24 }
  0x15   : > { %p31_p3 = scmp.ge.s32.totalorder %s30_s29, 2  ;;  %p78_p4 = scmp.ne.s32.totalorder %s1484_s24, %s1480_s23 }
  0x16   : > { %p79_p5 = scmp.eq.s32.totalorder %s682_s0, 1  ;;  %p84_p6 = scmp.ne.s32.totalorder %s1480_s23, %s1476_s22 }
  0x17   : > { %s2230_s29 = smov (%p31_p3, %s30_s29), 0  ;;  %p85_p8 = scmp.eq.s32.totalorder %s683_s28, 1 }
  0x18   : > { %2193 = sst [smem:[#allocation60_spill]] %s2230_s29  ;;  %p1589_p7 = por %p79_p5, %p78_p4 }
  0x19   : > { %s63_s5 = ssub.s32 %s1492_s26, %s2230_s29  ;;  %p684_p9 = scmp.ge.s32.totalorder %s1496_s27, 1 }
  0x1a   : > { %s2194_s4 = scalar_select %p1589_p7, 1, 0 }
  0x1b   : > { %p66_p10 = scmp.eq.s32.totalorder %s63_s5, 0  ;;  %p1596_p11 = por %p85_p8, %p84_p6 }
  0x1c   : > { %p92_p12 = scmp.lt.s32.totalorder %s1496_s27, 3  ;;  %p1608_p0 = scmp.eq.s32.totalorder %s682_s0, 0 }
  0x1d   : > { %s2195_s6 = scalar_select %p1596_p11, 1, 0 }
  0x1e   : > { %s1602_s7 = scalar_select %p66_p10, %s1484_s24, %s68_s30  }
  0x1f   : > { %2196 = sst [smem:[#allocation61_spill]] %s2195_s6  ;;  %p1604_p13 = pnand %p684_p9, %p92_p12 }
  0x20   : > { %2197 = sst [smem:[#allocation62_spill]] %s1602_s7  ;;  %s1503_s10 = smov [#allocation6]  }
  0x21   : > { %s2198_s8 = scalar_select %p1604_p13, 1, 0 }
  0x22   : > { %s2199_s9 = scalar_select %p1608_p0, 1, 0 }
  0x23   : > { %p870_p1 = pneg %p1604_p13  ;;  %s107_s11 = sshll.u32 %s1503_s10, 4  ;;  %s108_s11 = int_to_ptr.vmem [resolvable:$true] %s107_s11 }
  0x24   : > { %s2201_s2 = sld [smem:[#allocation64_spill]] }
  0x25   : > { %p1616_p2 = pnand %p1608_p0, %p870_p1 }
  0x27   : > { %p964_p4 = pneg %p1616_p2 }
  0x2a   : > { %s962_s15 = scalar_lea.hbm %s2201_s2, 256  ;;  %s967_s20 = scalar_lea.hbm %s2201_s2, 512 }
  0x2b   : > { %p963_p3 = scmp.ne.s32.totalorder %s2201_s2, %s962_s15  ;;  %p968_p8 = scmp.lt.u32.totalorder %s967_s20, %s962_s15 }
  0x2c   : > { %p969_p9 = scmp.lt.u32.totalorder %s962_s15, %s2201_s2 }
  0x2d   : > { %p965_p5 = pnand %p964_p4, %p963_p3 }
  0x2e   : > { %p970_p10 = por %p969_p9, %p968_p8 }
  0x2f   : > { %p966_p6 = pneg %p965_p5 }
  0x31   : > { %p971_p12 = pnand %p970_p10, %p966_p6 }
  0x33   : > { %974 = shalt.err (!%p971_p12)
}
  0x34   : > { %s975_s28 = scalar_lea.vmem %s108_s11, 256  ;;  %p983_p0 = scmp.lt.s32.totalorder %s108_s11, %s108_s11 }
  0x35   : > { %p976_p1 = scmp.ne.s32.totalorder %s108_s11, %s975_s28  ;;  %p984_p13 = scmp.lt.s32.totalorder %s975_s28, %s975_s28 }
  0x37   : > { %p978_p11 = pnand %p976_p1, %p964_p4  ;;  %p985_p3 = por %p984_p13, %p983_p0 }
  0x39   : > { %p979_p7 = pneg %p978_p11 }
  0x3b   : > { %p986_p5 = pnand %p985_p3, %p979_p7 }
  0x3d   : > { %989 = shalt.err (!%p986_p5)
}
  0x3e   : > { %s1504_s30 = smov 128   ;;  %s1505_s5 = smov 8  }
  0x3f   : > { %873 = dma.hbm_to_vmem [thread:$0]  (!%p1616_p2), %s2201_s2, 256, %s108_s11, [#allocation7], %s1504_s30, %s1504_s30, %s1505_s5  }
  0x40   : > { %p2202_p6 = scmp.ne.s32.totalorder %s2198_s8, 0 }
  0x42   : > { %123 = sbr.rel (%p2202_p6) target bundleno = 561 (0x231), region = 24 }
  0x49   : > { %p2203_p8 = scmp.ne.s32.totalorder %s2199_s9, 0 }
  0x4b   : > { %1465 = dma.done.wait (%p2203_p8), [#allocation7], 256  }
  0x4c   : > { %1467 = vsyncadd (%p2203_p8), [#allocation7], 4294967040  ;;  %s2179_s14 = sand.u32 1, %s1480_s23   ;;  %s1647_s15 = sshll.u32 %s1488_s25, 4 }
  0x4d   : > { %2204 = sst [smem:[#allocation63_spill]] %s1647_s15  ;;  %s1651_s11 = sshll.u32 %s2179_s14, 4 }
  0x4e   : > { %s143_s8 = sld [smem:[#allocation5 + %s1647_s15]]  ;;  %s1506_s12 = smov [#allocation2]  }
  0x4f   : > { %s157_s16 = sshll.u32 %s1506_s12, 4  ;;  %s161_s17 = sadd.s32 1, %s1647_s15  ;;  %s1655_s16 = int_to_ptr.vmem [resolvable:$true] %s157_s16 }
  0x50   : > { %s1657_s9 = sld [smem:[#allocation5 + %s161_s17]]  ;;  %s181_s18 = sadd.s32 2, %s1647_s15 }
  0x51   : > { %s1507_s19 = smov [#allocation2 + $0x1]   ;;  %s1660_s21 = sld [smem:[#allocation5 + %s181_s18]] }
  0x52   : > { %s177_s20 = sshll.u32 %s1507_s19, 4  ;;  %s1675_s18 = scalar_lea.hbm %s2172_s1, 8192  ;;  %s1662_s20 = int_to_ptr.vmem [resolvable:$true] %s177_s20 }
  0x54   : > { %p144_p7 = scmp.gt.s32.totalorder %s143_s8, 0  ;;  %p690_p11 = scmp.lt.s32.totalorder %s143_s8, 511 }
  0x56   : > { %s2232_s8 = smov (!%p144_p7, %s143_s8), 0  ;;  %p163_p13 = scmp.gt.s32.totalorder %s1657_s9, 0 }
  0x57   : > { %p696_p0 = scmp.lt.s32.totalorder %s1657_s9, 511  ;;  %s2234_s8 = smov (!%p690_p11, %s2232_s8), 511 }
  0x58   : > { %s164_s0 = scalar_select %p163_p13, %s1657_s9, 0 }
  0x59   : > { %s695_s28 = sshll.u32 %s2234_s8, 4  ;;  %p183_p2 = scmp.gt.s32.totalorder %s1660_s21, 0 }
  0x5a   : > { %s149_s10 = scalar_lea.hbm %s2172_s1, %s695_s28 }
  0x5b   : > { %s990_s13 = scalar_lea.hbm %s149_s10, 16  ;;  %p993_p10 = scmp.lt.u32.totalorder %s149_s10, %s2172_s1 }
  0x5c   : > { %p991_p9 = scmp.ne.s32.totalorder %s149_s10, %s990_s13  ;;  %p994_p12 = scmp.lt.u32.totalorder %s1675_s18, %s990_s13 }
  0x5d   : > { %p996_p3 = scmp.lt.u32.totalorder %s990_s13, %s149_s10 }
  0x5e   : > { %p995_p1 = por %p994_p12, %p993_p10 }
  0x60   : > { %p997_p5 = por %p996_p3, %p995_p1 }
  0x62   : > { %p998_p6 = pnand %p997_p5, %p991_p9 }
  0x64   : > { %1001 = shalt.err (!%p998_p6)  }
  0x65   : > { %s1002_s8 = scalar_lea.vmem %s1655_s16, 16  ;;  %s1684_s28 = scalar_lea.vmem %s1655_s16, 256 }
  0x66   : > { %p1003_p8 = scmp.ne.s32.totalorder %s1655_s16, %s1002_s8  ;;  %p1007_p7 = scmp.lt.s32.totalorder %s1655_s16, %s1655_s16 }
  0x67   : > { %p1008_p11 = scmp.lt.s32.totalorder %s1684_s28, %s1002_s8 }
  0x69   : > { %p1009_p13 = por %p1008_p11, %p1007_p7 }
  0x6b   : > { %p1010_p4 = pnand %p1009_p13, %p1003_p8 }
  0x6d   : > { %1013 = shalt.err (!%p1010_p4)  }
  0x6e   : > { %160 = dma.hbm_to_vmem [thread:$0]  %s149_s10, 16, %s1655_s16, [#allocation3] }
  0x6f   : > { %s2236_s0 = smov (!%p696_p0, %s164_s0), 511  ;;  %s1508_s5 = smov [#allocation2 + $0x2]  }
  0x70   : > { %s184_s14 = scalar_select %p183_p2, %s1660_s21, 0 }
  0x71   : > { %s701_s30 = sshll.u32 %s2236_s0, 4  ;;  %s197_s13 = sshll.u32 %s1508_s5, 4  ;;  %s1698_s13 = int_to_ptr.vmem [resolvable:$true] %s197_s13 }
  0x72   : > { %s168_s19 = scalar_lea.hbm %s2172_s1, %s701_s30 }
  0x73   : > { %s1014_s8 = scalar_lea.hbm %s168_s19, 16  ;;  %p1017_p9 = scmp.lt.u32.totalorder %s168_s19, %s2172_s1 }
  0x74   : > { %p1015_p4 = scmp.ne.s32.totalorder %s168_s19, %s1014_s8  ;;  %p1018_p10 = scmp.lt.u32.totalorder %s1675_s18, %s1014_s8 }
  0x75   : > { %p1020_p0 = scmp.lt.u32.totalorder %s1014_s8, %s168_s19 }
  0x76   : > { %p1019_p12 = por %p1018_p10, %p1017_p9 }
  0x78   : > { %p1021_p1 = por %p1020_p0, %p1019_p12 }
  0x7a   : > { %p1022_p2 = pnand %p1021_p1, %p1015_p4 }
  0x7c   : > { %1025 = shalt.err (!%p1022_p2)  }
  0x7d   : > { %s1026_s9 = scalar_lea.vmem %s1662_s20, 16  ;;  %p1031_p5 = scmp.lt.s32.totalorder %s1662_s20, %s1655_s16 }
  0x7e   : > { %p1027_p3 = scmp.ne.s32.totalorder %s1662_s20, %s1026_s9  ;;  %p1032_p6 = scmp.lt.s32.totalorder %s1684_s28, %s1026_s9 }
  0x80   : > { %p1033_p8 = por %p1032_p6, %p1031_p5 }
  0x82   : > { %p1034_p7 = pnand %p1033_p8, %p1027_p3 }
  0x84   : > { %1037 = shalt.err (!%p1034_p7)  }
  0x85   : > { %180 = dma.hbm_to_vmem [thread:$0]  %s168_s19, 16, %s1662_s20, [#allocation3] }
  0x86   : > { %p2205_p11 = scmp.lt.s32.totalorder %s1660_s21, 511  ;;  %s201_s2 = sadd.s32 3, %s1647_s15 }
  0x87   : > { %s1713_s0 = sld [smem:[#allocation5 + %s201_s2]] }
  0x88   : > { %s2238_s14 = smov (!%p2205_p11, %s184_s14), 511 }
  0x89   : > { %s707_s29 = sshll.u32 %s2238_s14, 4 }
  0x8a   : > { %s188_s5 = scalar_lea.hbm %s2172_s1, %s707_s29 }
  0x8b   : > { %s1038_s12 = scalar_lea.hbm %s188_s5, 16  ;;  %p1041_p4 = scmp.lt.u32.totalorder %s188_s5, %s2172_s1 }
  0x8c   : > { %p1039_p13 = scmp.ne.s32.totalorder %s188_s5, %s1038_s12  ;;  %p1042_p9 = scmp.lt.u32.totalorder %s1675_s18, %s1038_s12 }
  0x8d   : > { %p1044_p12 = scmp.lt.u32.totalorder %s1038_s12, %s188_s5 }
  0x8e   : > { %p1043_p10 = por %p1042_p9, %p1041_p4 }
  0x90   : > { %p1045_p0 = por %p1044_p12, %p1043_p10 }
  0x92   : > { %p1046_p1 = pnand %p1045_p0, %p1039_p13 }
  0x94   : > { %1049 = shalt.err (!%p1046_p1)  }
  0x95   : > { %s1050_s20 = scalar_lea.vmem %s1698_s13, 16  ;;  %p1055_p3 = scmp.lt.s32.totalorder %s1698_s13, %s1655_s16 }
  0x96   : > { %p1051_p2 = scmp.ne.s32.totalorder %s1698_s13, %s1050_s20  ;;  %p1056_p5 = scmp.lt.s32.totalorder %s1684_s28, %s1050_s20 }
  0x98   : > { %p1057_p6 = por %p1056_p5, %p1055_p3 }
  0x9a   : > { %p1058_p8 = pnand %p1057_p6, %p1051_p2 }
  0x9c   : > { %1061 = shalt.err (!%p1058_p8)  }
  0x9d   : > { %200 = dma.hbm_to_vmem [thread:$0]  %s188_s5, 16, %s1698_s13, [#allocation3] }
  0x9e   : > { %s1509_s21 = smov [#allocation2 + $0x3]   ;;  %s221_s19 = sadd.s32 4, %s1647_s15 }
  0x9f   : > { %s217_s14 = sshll.u32 %s1509_s21, 4  ;;  %s1729_s9 = sld [smem:[#allocation5 + %s221_s19]]  ;;  %s218_s14 = int_to_ptr.vmem [resolvable:$true] %s217_s14 }
  0xa0   : > { %s1510_s2 = smov [#allocation2 + $0x4]   ;;  %s241_s10 = sadd.s32 5, %s1647_s15 }
  0xa1   : > { %s237_s29 = sshll.u32 %s1510_s2, 4  ;;  %p203_p7 = scmp.gt.s32.totalorder %s1713_s0, 0  ;;  %s1737_s29 = int_to_ptr.vmem [resolvable:$true] %s237_s29 }
  0xa2   : > { %p708_p11 = scmp.lt.s32.totalorder %s1713_s0, 511  ;;  %s1734_s30 = sld [smem:[#allocation5 + %s241_s10]] }
  0xa3   : > { %s2240_s0 = smov (!%p203_p7, %s1713_s0), 0  ;;  %s261_s13 = sadd.s32 6, %s1647_s15 }
  0xa4   : > { %s2242_s0 = smov (!%p708_p11, %s2240_s0), 511 }
  0xa5   : > { %p223_p13 = scmp.gt.s32.totalorder %s1729_s9, 0  ;;  %s713_s5 = sshll.u32 %s2242_s0, 4 }
  0xa6   : > { %s208_s8 = scalar_lea.hbm %s2172_s1, %s713_s5 }
  0xa7   : > { %s1062_s20 = scalar_lea.hbm %s208_s8, 16  ;;  %p1065_p12 = scmp.lt.u32.totalorder %s208_s8, %s2172_s1 }
  0xa8   : > { %p243_p9 = scmp.gt.s32.totalorder %s1734_s30, 0  ;;  %p1063_p10 = scmp.ne.s32.totalorder %s208_s8, %s1062_s20 }
  0xa9   : > { %p1066_p0 = scmp.lt.u32.totalorder %s1675_s18, %s1062_s20  ;;  %p1068_p2 = scmp.lt.u32.totalorder %s1062_s20, %s208_s8 }
  0xab   : > { %p1067_p1 = por %p1066_p0, %p1065_p12 }
  0xad   : > { %p1069_p3 = por %p1068_p2, %p1067_p1 }
  0xaf   : > { %p1070_p5 = pnand %p1069_p3, %p1063_p10 }
  0xb1   : > { %1073 = shalt.err (!%p1070_p5)  }
  0xb2   : > { %s1074_s2 = scalar_lea.vmem %s218_s14, 16  ;;  %p1079_p8 = scmp.lt.s32.totalorder %s218_s14, %s1655_s16 }
  0xb3   : > { %p1075_p6 = scmp.ne.s32.totalorder %s218_s14, %s1074_s2  ;;  %p1080_p7 = scmp.lt.s32.totalorder %s1684_s28, %s1074_s2 }
  0xb5   : > { %p1081_p11 = por %p1080_p7, %p1079_p8 }
  0xb7   : > { %p1082_p4 = pnand %p1081_p11, %p1075_p6 }
  0xb9   : > { %1085 = shalt.err (!%p1082_p4)  }
  0xba   : > { %220 = dma.hbm_to_vmem [thread:$0]  %s208_s8, 16, %s218_s14, [#allocation3] }
  0xbb   : > { %s224_s0 = scalar_select %p223_p13, %s1729_s9, 0 }
  0xbc   : > { %s244_s10 = scalar_select %p243_p9, %s1734_s30, 0 }
  0xbd   : > { %p2206_p10 = scmp.lt.s32.totalorder %s1729_s9, 511  ;;  %p720_p12 = scmp.lt.s32.totalorder %s1734_s30, 511 }
  0xbe   : > { %s1511_s5 = smov [#allocation2 + $0x5]   ;;  %s1761_s20 = sld [smem:[#allocation5 + %s261_s13]] }
  0xbf   : > { %s2244_s0 = smov (!%p2206_p10, %s224_s0), 511  ;;  %s257_s12 = sshll.u32 %s1511_s5, 4  ;;  %s258_s12 = int_to_ptr.vmem [resolvable:$true] %s257_s12 }
  0xc0   : > { %s719_s17 = sshll.u32 %s2244_s0, 4 }
  0xc1   : > { %s228_s21 = scalar_lea.hbm %s2172_s1, %s719_s17 }
  0xc2   : > { %s1086_s19 = scalar_lea.hbm %s228_s21, 16  ;;  %p1089_p13 = scmp.lt.u32.totalorder %s228_s21, %s2172_s1 }
  0xc3   : > { %p1087_p4 = scmp.ne.s32.totalorder %s228_s21, %s1086_s19  ;;  %p1090_p0 = scmp.lt.u32.totalorder %s1675_s18, %s1086_s19 }
  0xc4   : > { %p1092_p1 = scmp.lt.u32.totalorder %s1086_s19, %s228_s21 }
  0xc5   : > { %p1091_p9 = por %p1090_p0, %p1089_p13 }
  0xc7   : > { %p1093_p2 = por %p1092_p1, %p1091_p9 }
  0xc9   : > { %p1094_p3 = pnand %p1093_p2, %p1087_p4 }
  0xcb   : > { %1097 = shalt.err (!%p1094_p3)  }
  0xcc   : > { %s1098_s9 = scalar_lea.vmem %s1737_s29, 16  ;;  %p1103_p6 = scmp.lt.s32.totalorder %s1737_s29, %s1655_s16 }
  0xcd   : > { %p1099_p5 = scmp.ne.s32.totalorder %s1737_s29, %s1098_s9  ;;  %p1104_p8 = scmp.lt.s32.totalorder %s1684_s28, %s1098_s9 }
  0xcf   : > { %p1105_p7 = por %p1104_p8, %p1103_p6 }
  0xd1   : > { %p1106_p11 = pnand %p1105_p7, %p1099_p5 }
  0xd3   : > { %1109 = shalt.err (!%p1106_p11)  }
  0xd4   : > { %240 = dma.hbm_to_vmem [thread:$0]  %s228_s21, 16, %s1737_s29, [#allocation3] }
  0xd5   : > { %s2246_s10 = smov (!%p720_p12, %s244_s10), 511  ;;  %s1512_s26 = smov [#allocation2 + $0x6]  }
  0xd6   : > { %s277_s13 = sshll.u32 %s1512_s26, 4  ;;  %s725_s0 = sshll.u32 %s2246_s10, 4  ;;  %s278_s13 = int_to_ptr.vmem [resolvable:$true] %s277_s13 }
  0xd7   : > { %s281_s5 = sadd.s32 7, %s1647_s15  ;;  %s248_s8 = scalar_lea.hbm %s2172_s1, %s725_s0 }
  0xd8   : > { %p263_p10 = scmp.gt.s32.totalorder %s1761_s20, 0  ;;  %s1110_s19 = scalar_lea.hbm %s248_s8, 16 }
  0xd9   : > { %p1111_p4 = scmp.ne.s32.totalorder %s248_s8, %s1110_s19  ;;  %p1113_p13 = scmp.lt.u32.totalorder %s248_s8, %s2172_s1 }
  0xda   : > { %p1114_p0 = scmp.lt.u32.totalorder %s1675_s18, %s1110_s19  ;;  %p1116_p1 = scmp.lt.u32.totalorder %s1110_s19, %s248_s8 }
  0xdc   : > { %p1115_p9 = por %p1114_p0, %p1113_p13 }
  0xde   : > { %p1117_p12 = por %p1116_p1, %p1115_p9 }
  0xe0   : > { %p1118_p2 = pnand %p1117_p12, %p1111_p4 }
  0xe2   : > { %1121 = shalt.err (!%p1118_p2)  }
  0xe3   : > { %s1122_s29 = scalar_lea.vmem %s258_s12, 16  ;;  %p1127_p5 = scmp.lt.s32.totalorder %s258_s12, %s1655_s16 }
  0xe4   : > { %p1123_p3 = scmp.ne.s32.totalorder %s258_s12, %s1122_s29  ;;  %p1128_p6 = scmp.lt.s32.totalorder %s1684_s28, %s1122_s29 }
  0xe6   : > { %p1129_p8 = por %p1128_p6, %p1127_p5 }
  0xe8   : > { %p1130_p7 = pnand %p1129_p8, %p1123_p3 }
  0xea   : > { %1133 = shalt.err (!%p1130_p7)  }
  0xeb   : > { %260 = dma.hbm_to_vmem [thread:$0]  %s248_s8, 16, %s258_s12, [#allocation3] }
  0xec   : > { %s264_s30 = scalar_select %p263_p10, %s1761_s20, 0 }
  0xed   : > { %p726_p11 = scmp.lt.s32.totalorder %s1761_s20, 511  ;;  %s282_s10 = sld [smem:[#allocation5 + %s281_s5]] }
  0xef   : > { %s2248_s30 = smov (!%p726_p11, %s264_s30), 511 }
  0xf0   : > { %s731_s21 = sshll.u32 %s2248_s30, 4 }
  0xf1   : > { %s268_s17 = scalar_lea.hbm %s2172_s1, %s731_s21 }
  0xf2   : > { %s1134_s14 = scalar_lea.hbm %s268_s17, 16  ;;  %p1137_p13 = scmp.lt.u32.totalorder %s268_s17, %s2172_s1 }
  0xf3   : > { %p1135_p4 = scmp.ne.s32.totalorder %s268_s17, %s1134_s14  ;;  %p1138_p0 = scmp.lt.u32.totalorder %s1675_s18, %s1134_s14 }
  0xf4   : > { %p1140_p1 = scmp.lt.u32.totalorder %s1134_s14, %s268_s17 }
  0xf5   : > { %p1139_p9 = por %p1138_p0, %p1137_p13 }
  0xf7   : > { %p1141_p12 = por %p1140_p1, %p1139_p9 }
  0xf9   : > { %p1142_p10 = pnand %p1141_p12, %p1135_p4 }
  0xfb   : > { %1145 = shalt.err (!%p1142_p10)  }
  0xfc   : > { %s1146_s12 = scalar_lea.vmem %s278_s13, 16  ;;  %p1151_p3 = scmp.lt.s32.totalorder %s278_s13, %s1655_s16 }
  0xfd   : > { %p1147_p2 = scmp.ne.s32.totalorder %s278_s13, %s1146_s12  ;;  %p1152_p5 = scmp.lt.s32.totalorder %s1684_s28, %s1146_s12 }
  0xff   : > { %p1153_p6 = por %p1152_p5, %p1151_p3 }
 0x101   : > { %p1154_p8 = pnand %p1153_p6, %p1147_p2 }
 0x103   : > { %1157 = shalt.err (!%p1154_p8)  }
 0x104   : > { %280 = dma.hbm_to_vmem [thread:$0]  %s268_s17, 16, %s278_s13, [#allocation3] }
 0x105   : > { %p283_p7 = scmp.gt.s32.totalorder %s282_s10, 0  ;;  %p732_p11 = scmp.lt.s32.totalorder %s282_s10, 511 }
 0x106   : > { %s1513_s20 = smov [#allocation2 + $0x7]  }
 0x107   : > { %s297_s5 = sshll.u32 %s1513_s20, 4  ;;  %s2250_s10 = smov (!%p283_p7, %s282_s10), 0  ;;  %s298_s5 = int_to_ptr.vmem [resolvable:$true] %s297_s5 }
 0x108   : > { %s2252_s10 = smov (!%p732_p11, %s2250_s10), 511 }
 0x109   : > { %s737_s8 = sshll.u32 %s2252_s10, 4 }
 0x10a   : > { %s288_s30 = scalar_lea.hbm %s2172_s1, %s737_s8 }
 0x10b   : > { %s1158_s21 = scalar_lea.hbm %s288_s30, 16  ;;  %p1161_p13 = scmp.lt.u32.totalorder %s288_s30, %s2172_s1 }
 0x10c   : > { %p1159_p4 = scmp.ne.s32.totalorder %s288_s30, %s1158_s21  ;;  %p1162_p0 = scmp.lt.u32.totalorder %s1675_s18, %s1158_s21 }
 0x10d   : > { %p1164_p1 = scmp.lt.u32.totalorder %s1158_s21, %s288_s30 }
 0x10e   : > { %p1163_p9 = por %p1162_p0, %p1161_p13 }
 0x110   : > { %p1165_p12 = por %p1164_p1, %p1163_p9 }
 0x112   : > { %p1166_p10 = pnand %p1165_p12, %p1159_p4 }
 0x114   : > { %1169 = shalt.err (!%p1166_p10)  }
 0x115   : > { %s1170_s13 = scalar_lea.vmem %s298_s5, 16  ;;  %p1175_p3 = scmp.lt.s32.totalorder %s298_s5, %s1655_s16 }
 0x116   : > { %p1171_p2 = scmp.ne.s32.totalorder %s298_s5, %s1170_s13  ;;  %p1176_p5 = scmp.lt.s32.totalorder %s1684_s28, %s1170_s13 }
 0x118   : > { %p1177_p6 = por %p1176_p5, %p1175_p3 }
 0x11a   : > { %p1178_p8 = pnand %p1177_p6, %p1171_p2 }
 0x11c   : > { %1181 = shalt.err (!%p1178_p8)  }
 0x11d   : > { %300 = dma.hbm_to_vmem [thread:$0]  %s288_s30, 16, %s298_s5, [#allocation3] }
 0x11e   : > { %s1812_s17 = smov 0  }
 0x11f LB: >> { %s2207_s15 = sld [smem:[#allocation63_spill]]  ;;  %s1818_s14 = sadd.s32 1, %s1500_s17   ;;  %s1500_s17 = sphi %s1812_s17, %s2214_s17  }
 0x120   : >> { %s1821_s19 = sshll.u32 %s1500_s17, 3  ;;  %p880_p11 = scmp.lt.s32.totalorder %s1818_s14, 2 }
 0x121   : >> { %s821_s2 = sadd.s32 8, %s1821_s19  ;;  %s1835_s8 = scalar_lea.vmem [#allocation2], %s1821_s19 }
 0x122   : >> { %s844_s20 = scalar_select %p880_p11, [#allocation5], [#allocation44] }
 0x123   : >> { %s590_s9 = scalar_lea.vmem %s1835_s8, 8 [#allocation2]  ;;  %s314_s29 = sand.u32 1, %s1818_s14 }
 0x124   : >> { %s331_s21 = sshll.u32 %s590_s9, 4  ;;  %s1861_s6 = scalar_lea.sflag [#allocation3], %s314_s29  ;;  %s1846_s21 = int_to_ptr.vmem [resolvable:$true] %s331_s21 }
 0x125   : >> { %s1827_s12 = sadd.s32 %s821_s2, %s2207_s15  ;;  %s596_s2 = scalar_lea.vmem %s1835_s8, 9 [#allocation2] }
 0x126   : >> { %s845_s5 = scalar_select %p880_p11, %s1827_s12, 0 }
 0x127   : >> { %s335_s0 = sadd.s32 1, %s1827_s12  ;;  %s352_s15 = sshll.u32 %s596_s2, 4  ;;  %s1855_s15 = int_to_ptr.vmem [resolvable:$true] %s352_s15 }
 0x128   : >> { %s315_s30 = sld [smem:[%s844_s20 + %s845_s5]]  ;;  %s2254_s0 = smov (!%p880_p11, %s335_s0), 0 }
 0x129   : >> { %s847_s13 = scalar_select %p880_p11, [#allocation5], [#allocation45] }
 0x12a   : >> { %s356_s20 = sadd.s32 2, %s1827_s12 }
 0x12b   : >> { %s1848_s10 = sld [smem:[%s847_s13 + %s2254_s0]] }
 0x12c   : >> { %s1853_s5 = scalar_select %p880_p11, [#allocation5], [#allocation46] }
 0x12e   : >> { %p316_p4 = scmp.gt.s32.totalorder %s315_s30, 0  ;;  %p740_p13 = scmp.lt.s32.totalorder %s315_s30, 511 }
 0x130   : >> { %s2256_s30 = smov (!%p316_p4, %s315_s30), 0 }
 0x131   : >> { %s2258_s30 = smov (!%p740_p13, %s2256_s30), 511 }
 0x132   : >> { %s745_s9 = sshll.u32 %s2258_s30, 4 }
 0x133   : >> { %s321_s24 = scalar_lea.hbm %s2172_s1, %s745_s9 }
 0x134   : >> { %s1182_s0 = scalar_lea.hbm %s321_s24, 16  ;;  %p1187_p10 = scmp.lt.u32.totalorder %s321_s24, %s2172_s1 }
 0x135   : >> { %p1183_p9 = scmp.ne.s32.totalorder %s321_s24, %s1182_s0  ;;  %p1188_p2 = scmp.lt.u32.totalorder %s1675_s18, %s1182_s0 }
 0x136   : >> { %p1190_p5 = scmp.lt.u32.totalorder %s1182_s0, %s321_s24 }
 0x137   : >> { %p1184_p1 = pnand %p1183_p9, %p880_p11  ;;  %p1189_p3 = por %p1188_p2, %p1187_p10 }
 0x139   : >> { %p1185_p12 = pneg %p1184_p1  ;;  %p1191_p6 = por %p1190_p5, %p1189_p3 }
 0x13b   : >> { %p1192_p8 = pnand %p1191_p6, %p1185_p12 }
 0x13d   : >> { %1195 = shalt.err (!%p1192_p8)  }
 0x13e   : >> { %s1196_s7 = scalar_lea.vmem %s1846_s21, 16  ;;  %p1203_p1 = scmp.lt.s32.totalorder %s1846_s21, %s1655_s16 }
 0x13f   : >> { %p1197_p4 = scmp.ne.s32.totalorder %s1846_s21, %s1196_s7  ;;  %p1204_p7 = scmp.lt.s32.totalorder %s1684_s28, %s1196_s7 }
 0x141   : >> { %p1198_p13 = pnand %p1197_p4, %p880_p11  ;;  %p1205_p0 = por %p1204_p7, %p1203_p1 }
 0x143   : >> { %p1199_p9 = pneg %p1198_p13 }
 0x145   : >> { %p1206_p2 = pnand %p1205_p0, %p1199_p9 }
 0x147   : >> { %1209 = shalt.err (!%p1206_p2)  }
 0x148   : >> { %846 = dma.hbm_to_vmem [thread:$0]  (%p880_p11), %s321_s24, 16, %s1846_s21, %s1861_s6 }
 0x149   : >> { %p2208_p12 = scmp.gt.s32.totalorder %s1848_s10, 0  ;;  %p747_p7 = scmp.lt.s32.totalorder %s1848_s10, 511 }
 0x14a   : >> { %s601_s30 = scalar_lea.vmem %s1835_s8, 10 [#allocation2]  ;;  %s2260_s20 = smov (!%p880_p11, %s356_s20), 0 }
 0x14b   : >> { %s338_s29 = scalar_select %p2208_p12, %s1848_s10, 0 }
 0x14c   : >> { %s1890_s26 = sld [smem:[%s1853_s5 + %s2260_s20]]  ;;  %s1892_s9 = sshll.u32 %s601_s30, 4  ;;  %s1926_s9 = int_to_ptr.vmem [resolvable:$true] %s1892_s9 }
 0x14d   : >> { %s2262_s29 = smov (!%p747_p7, %s338_s29), 511  ;;  %s377_s13 = sadd.s32 3, %s1827_s12 }
 0x14e   : >> { %s752_s0 = sshll.u32 %s2262_s29, 4  ;;  %s606_s24 = scalar_lea.vmem %s1835_s8, 11 [#allocation2] }
 0x14f   : >> { %s343_s22 = scalar_lea.hbm %s2172_s1, %s752_s0 }
 0x150   : >> { %s1210_s21 = scalar_lea.hbm %s343_s22, 16  ;;  %p1215_p5 = scmp.lt.u32.totalorder %s343_s22, %s2172_s1 }
 0x151   : >> { %p1211_p0 = scmp.ne.s32.totalorder %s343_s22, %s1210_s21  ;;  %p1216_p6 = scmp.lt.u32.totalorder %s1675_s18, %s1210_s21 }
 0x152   : >> { %p1218_p4 = scmp.lt.u32.totalorder %s1210_s21, %s343_s22 }
 0x153   : >> { %p1212_p10 = pnand %p1211_p0, %p880_p11  ;;  %p1217_p8 = por %p1216_p6, %p1215_p5 }
 0x155   : >> { %p1213_p3 = pneg %p1212_p10  ;;  %p1219_p13 = por %p1218_p4, %p1217_p8 }
 0x157   : >> { %p1220_p9 = pnand %p1219_p13, %p1213_p3 }
 0x159   : >> { %1223 = shalt.err (!%p1220_p9)  }
 0x15a   : >> { %s1224_s20 = scalar_lea.vmem %s1855_s15, 16  ;;  %p1231_p7 = scmp.lt.s32.totalorder %s1855_s15, %s1655_s16 }
 0x15b   : >> { %p1225_p1 = scmp.ne.s32.totalorder %s1855_s15, %s1224_s20  ;;  %p1232_p0 = scmp.lt.s32.totalorder %s1684_s28, %s1224_s20 }
 0x15d   : >> { %p1226_p2 = pnand %p1225_p1, %p880_p11  ;;  %p1233_p10 = por %p1232_p0, %p1231_p7 }
 0x15f   : >> { %p1227_p12 = pneg %p1226_p2 }
 0x161   : >> { %p1234_p5 = pnand %p1233_p10, %p1227_p12 }
 0x163   : >> { %1237 = shalt.err (!%p1234_p5)  }
 0x164   : >> { %849 = dma.hbm_to_vmem [thread:$0]  (%p880_p11), %s343_s22, 16, %s1855_s15, %s1861_s6 }
 0x165   : >> { %s853_s27 = scalar_select %p880_p11, [#allocation5], [#allocation47] }
 0x166   : >> { %s2264_s13 = smov (!%p880_p11, %s377_s13), 0  ;;  %p358_p3 = scmp.gt.s32.totalorder %s1890_s26, 0 }
 0x167   : >> { %p754_p6 = scmp.lt.s32.totalorder %s1890_s26, 511  ;;  %s1922_s5 = sld [smem:[%s853_s27 + %s2264_s13]] }
 0x168   : >> { %s2266_s26 = smov (!%p358_p3, %s1890_s26), 0  ;;  %s1928_s29 = sshll.u32 %s606_s24, 4  ;;  %s395_s29 = int_to_ptr.vmem [resolvable:$true] %s1928_s29 }
 0x169   : >> { %s2268_s26 = smov (!%p754_p6, %s2266_s26), 511  ;;  %s398_s15 = sadd.s32 4, %s1827_s12 }
 0x16a   : >> { %s1932_s30 = scalar_select %p880_p11, [#allocation5], [#allocation48] }
 0x16b   : >> { %s759_s22 = sshll.u32 %s2268_s26, 4 }
 0x16c   : >> { %s364_s7 = scalar_lea.hbm %s2172_s1, %s759_s22 }
 0x16d   : >> { %s1238_s21 = scalar_lea.hbm %s364_s7, 16  ;;  %p1243_p1 = scmp.lt.u32.totalorder %s364_s7, %s2172_s1 }
 0x16e   : >> { %p1239_p4 = scmp.ne.s32.totalorder %s364_s7, %s1238_s21  ;;  %p1244_p2 = scmp.lt.u32.totalorder %s1675_s18, %s1238_s21 }
 0x16f   : >> { %p1246_p7 = scmp.lt.u32.totalorder %s1238_s21, %s364_s7 }
 0x170   : >> { %p1240_p13 = pnand %p1239_p4, %p880_p11  ;;  %p1245_p12 = por %p1244_p2, %p1243_p1 }
 0x172   : >> { %p1241_p9 = pneg %p1240_p13  ;;  %p1247_p0 = por %p1246_p7, %p1245_p12 }
 0x174   : >> { %p1248_p10 = pnand %p1247_p0, %p1241_p9 }
 0x176   : >> { %1251 = shalt.err (!%p1248_p10)  }
 0x177   : >> { %s1252_s26 = scalar_lea.vmem %s1926_s9, 16  ;;  %p1259_p4 = scmp.lt.s32.totalorder %s1926_s9, %s1655_s16 }
 0x178   : >> { %p1253_p5 = scmp.ne.s32.totalorder %s1926_s9, %s1252_s26  ;;  %p1260_p13 = scmp.lt.s32.totalorder %s1684_s28, %s1252_s26 }
 0x17a   : >> { %p1254_p3 = pnand %p1253_p5, %p880_p11  ;;  %p1261_p8 = por %p1260_p13, %p1259_p4 }
 0x17c   : >> { %p1255_p6 = pneg %p1254_p3 }
 0x17e   : >> { %p1262_p1 = pnand %p1261_p8, %p1255_p6 }
 0x180   : >> { %1265 = shalt.err (!%p1262_p1)  }
 0x181   : >> { %852 = dma.hbm_to_vmem [thread:$0]  (%p880_p11), %s364_s7, 16, %s1926_s9, %s1861_s6 }
 0x182   : >> { %p2209_p9 = scmp.gt.s32.totalorder %s1922_s5, 0  ;;  %p761_p2 = scmp.lt.s32.totalorder %s1922_s5, 511 }
 0x183   : >> { %s611_s20 = scalar_lea.vmem %s1835_s8, 12 [#allocation2]  ;;  %s2270_s15 = smov (!%p880_p11, %s398_s15), 0 }
 0x184   : >> { %s380_s24 = scalar_select %p2209_p9, %s1922_s5, 0 }
 0x185   : >> { %s1965_s27 = sld [smem:[%s1932_s30 + %s2270_s15]]  ;;  %s1967_s0 = sshll.u32 %s611_s20, 4  ;;  %s1996_s0 = int_to_ptr.vmem [resolvable:$true] %s1967_s0 }
 0x186   : >> { %s2272_s24 = smov (!%p761_p2, %s380_s24), 511  ;;  %s419_s10 = sadd.s32 5, %s1827_s12 }
 0x187   : >> { %s766_s22 = sshll.u32 %s2272_s24, 4 }
 0x188   : >> { %s385_s13 = scalar_lea.hbm %s2172_s1, %s766_s22 }
 0x189   : >> { %s1266_s9 = scalar_lea.hbm %s385_s13, 16  ;;  %p1271_p0 = scmp.lt.u32.totalorder %s385_s13, %s2172_s1 }
 0x18a   : >> { %p1267_p8 = scmp.ne.s32.totalorder %s385_s13, %s1266_s9  ;;  %p1272_p10 = scmp.lt.u32.totalorder %s1675_s18, %s1266_s9 }
 0x18b   : >> { %p1274_p3 = scmp.lt.u32.totalorder %s1266_s9, %s385_s13 }
 0x18c   : >> { %p1268_p12 = pnand %p1267_p8, %p880_p11  ;;  %p1273_p5 = por %p1272_p10, %p1271_p0 }
 0x18e   : >> { %p1269_p7 = pneg %p1268_p12  ;;  %p1275_p6 = por %p1274_p3, %p1273_p5 }
 0x190   : >> { %p1276_p4 = pnand %p1275_p6, %p1269_p7 }
 0x192   : >> { %1279 = shalt.err (!%p1276_p4)  }
 0x193   : >> { %s1280_s30 = scalar_lea.vmem %s395_s29, 16  ;;  %p1287_p2 = scmp.lt.s32.totalorder %s395_s29, %s1655_s16 }
 0x194   : >> { %p1281_p13 = scmp.ne.s32.totalorder %s395_s29, %s1280_s30  ;;  %p1288_p8 = scmp.lt.s32.totalorder %s1684_s28, %s1280_s30 }
 0x196   : >> { %p1282_p1 = pnand %p1281_p13, %p880_p11  ;;  %p1289_p12 = por %p1288_p8, %p1287_p2 }
 0x198   : >> { %p1283_p9 = pneg %p1282_p1 }
 0x19a   : >> { %p1290_p0 = pnand %p1289_p12, %p1283_p9 }
 0x19c   : >> { %1293 = shalt.err (!%p1290_p0)  }
 0x19d   : >> { %855 = dma.hbm_to_vmem [thread:$0]  (%p880_p11), %s385_s13, 16, %s395_s29, %s1861_s6 }
 0x19e   : >> { %s859_s15 = scalar_select %p880_p11, [#allocation5], [#allocation49] }
 0x19f   : >> { %s2274_s10 = smov (!%p880_p11, %s419_s10), 0  ;;  %p400_p7 = scmp.gt.s32.totalorder %s1965_s27, 0 }
 0x1a0   : >> { %p768_p10 = scmp.lt.s32.totalorder %s1965_s27, 511  ;;  %s1992_s26 = sld [smem:[%s859_s15 + %s2274_s10]] }
 0x1a1   : >> { %s2276_s27 = smov (!%p400_p7, %s1965_s27), 0  ;;  %s616_s24 = scalar_lea.vmem %s1835_s8, 13 [#allocation2] }
 0x1a2   : >> { %s2278_s27 = smov (!%p768_p10, %s2276_s27), 511  ;;  %s440_s22 = sadd.s32 6, %s1827_s12 }
 0x1a3   : >> { %s2001_s20 = scalar_select %p880_p11, [#allocation5], [#allocation50] }
 0x1a4   : >> { %s773_s29 = sshll.u32 %s2278_s27, 4 }
 0x1a5   : >> { %s406_s13 = scalar_lea.hbm %s2172_s1, %s773_s29 }
 0x1a6   : >> { %s1294_s9 = scalar_lea.hbm %s406_s13, 16  ;;  %p1299_p13 = scmp.lt.u32.totalorder %s406_s13, %s2172_s1 }
 0x1a7   : >> { %p1295_p3 = scmp.ne.s32.totalorder %s406_s13, %s1294_s9  ;;  %p1300_p1 = scmp.lt.u32.totalorder %s1675_s18, %s1294_s9 }
 0x1a8   : >> { %p1302_p2 = scmp.lt.u32.totalorder %s1294_s9, %s406_s13 }
 0x1a9   : >> { %p1296_p6 = pnand %p1295_p3, %p880_p11  ;;  %p1301_p9 = por %p1300_p1, %p1299_p13 }
 0x1ab   : >> { %p1297_p4 = pneg %p1296_p6  ;;  %p1303_p8 = por %p1302_p2, %p1301_p9 }
 0x1ad   : >> { %p1304_p12 = pnand %p1303_p8, %p1297_p4 }
 0x1af   : >> { %1307 = shalt.err (!%p1304_p12)  }
 0x1b0   : >> { %s1308_s27 = scalar_lea.vmem %s1996_s0, 16  ;;  %p1315_p3 = scmp.lt.s32.totalorder %s1996_s0, %s1655_s16 }
 0x1b1   : >> { %p1309_p0 = scmp.ne.s32.totalorder %s1996_s0, %s1308_s27  ;;  %p1316_p6 = scmp.lt.s32.totalorder %s1684_s28, %s1308_s27 }
 0x1b3   : >> { %p1310_p7 = pnand %p1309_p0, %p880_p11  ;;  %p1317_p5 = por %p1316_p6, %p1315_p3 }
 0x1b5   : >> { %p1311_p10 = pneg %p1310_p7 }
 0x1b7   : >> { %p1318_p1 = pnand %p1317_p5, %p1311_p10 }
 0x1b9   : >> { %1321 = shalt.err (!%p1318_p1)  }
 0x1ba   : >> { %858 = dma.hbm_to_vmem [thread:$0]  (%p880_p11), %s406_s13, 16, %s1996_s0, %s1861_s6 }
 0x1bb   : >> { %p2210_p4 = scmp.gt.s32.totalorder %s1992_s26, 0  ;;  %p775_p13 = scmp.lt.s32.totalorder %s1992_s26, 511 }
 0x1bc   : >> { %s436_s30 = sshll.u32 %s616_s24, 4  ;;  %s2280_s22 = smov (!%p880_p11, %s440_s22), 0  ;;  %s437_s30 = int_to_ptr.vmem [resolvable:$true] %s436_s30 }
 0x1bd   : >> { %s422_s7 = scalar_select %p2210_p4, %s1992_s26, 0 }
 0x1be   : >> { %s2034_s15 = sld [smem:[%s2001_s20 + %s2280_s22]]  ;;  %s621_s2 = scalar_lea.vmem %s1835_s8, 14 [#allocation2] }
 0x1bf   : >> { %s2282_s7 = smov (!%p775_p13, %s422_s7), 511  ;;  %s461_s5 = sadd.s32 7, %s1827_s12 }
 0x1c0   : >> { %s780_s29 = sshll.u32 %s2282_s7, 4 }
 0x1c1   : >> { %s427_s10 = scalar_lea.hbm %s2172_s1, %s780_s29 }
 0x1c2   : >> { %s1322_s0 = scalar_lea.hbm %s427_s10, 16  ;;  %p1327_p8 = scmp.lt.u32.totalorder %s427_s10, %s2172_s1 }
 0x1c3   : >> { %p1323_p5 = scmp.ne.s32.totalorder %s427_s10, %s1322_s0  ;;  %p1328_p12 = scmp.lt.u32.totalorder %s1675_s18, %s1322_s0 }
 0x1c4   : >> { %p1330_p7 = scmp.lt.u32.totalorder %s1322_s0, %s427_s10 }
 0x1c5   : >> { %p1324_p9 = pnand %p1323_p5, %p880_p11  ;;  %p1329_p0 = por %p1328_p12, %p1327_p8 }
 0x1c7   : >> { %p1325_p2 = pneg %p1324_p9  ;;  %p1331_p10 = por %p1330_p7, %p1329_p0 }
 0x1c9   : >> { %p1332_p3 = pnand %p1331_p10, %p1325_p2 }
 0x1cb   : >> { %1335 = shalt.err (!%p1332_p3)  }
 0x1cc   : >> { %s1336_s20 = scalar_lea.vmem %s437_s30, 16  ;;  %p1343_p13 = scmp.lt.s32.totalorder %s437_s30, %s1655_s16 }
 0x1cd   : >> { %p1337_p6 = scmp.ne.s32.totalorder %s437_s30, %s1336_s20  ;;  %p1344_p5 = scmp.lt.s32.totalorder %s1684_s28, %s1336_s20 }
 0x1cf   : >> { %p1338_p1 = pnand %p1337_p6, %p880_p11  ;;  %p1345_p9 = por %p1344_p5, %p1343_p13 }
 0x1d1   : >> { %p1339_p4 = pneg %p1338_p1 }
 0x1d3   : >> { %p1346_p8 = pnand %p1345_p9, %p1339_p4 }
 0x1d5   : >> { %1349 = shalt.err (!%p1346_p8)  }
 0x1d6   : >> { %861 = dma.hbm_to_vmem [thread:$0]  (%p880_p11), %s427_s10, 16, %s437_s30, %s1861_s6 }
 0x1d7   : >> { %s865_s12 = scalar_select %p880_p11, [#allocation5], [#allocation51] }
 0x1d8   : >> { %s2284_s5 = smov (!%p880_p11, %s461_s5), 0  ;;  %p442_p2 = scmp.gt.s32.totalorder %s2034_s15, 0 }
 0x1d9   : >> { %p782_p12 = scmp.lt.s32.totalorder %s2034_s15, 511  ;;  %s457_s22 = sshll.u32 %s621_s2, 4  ;;  %s458_s22 = int_to_ptr.vmem [resolvable:$true] %s457_s22 }
 0x1da   : >> { %s2060_s13 = sld [smem:[%s865_s12 + %s2284_s5]]  ;;  %s2286_s15 = smov (!%p442_p2, %s2034_s15), 0 }
 0x1db   : >> { %s2288_s15 = smov (!%p782_p12, %s2286_s15), 511  ;;  %s626_s7 = scalar_lea.vmem %s1835_s8, 15 [#allocation2] }
 0x1dc   : >> { %s787_s27 = sshll.u32 %s2288_s15, 4 }
 0x1dd   : >> { %s448_s30 = scalar_lea.hbm %s2172_s1, %s787_s27 }
 0x1de   : >> { %s1350_s9 = scalar_lea.hbm %s448_s30, 16  ;;  %p1355_p6 = scmp.lt.u32.totalorder %s448_s30, %s2172_s1 }
 0x1df   : >> { %p1351_p7 = scmp.ne.s32.totalorder %s448_s30, %s1350_s9  ;;  %p1356_p1 = scmp.lt.u32.totalorder %s1675_s18, %s1350_s9 }
 0x1e0   : >> { %p1358_p13 = scmp.lt.u32.totalorder %s1350_s9, %s448_s30 }
 0x1e1   : >> { %p1352_p10 = pnand %p1351_p7, %p880_p11  ;;  %p1357_p4 = por %p1356_p1, %p1355_p6 }
 0x1e3   : >> { %p1353_p3 = pneg %p1352_p10  ;;  %p1359_p5 = por %p1358_p13, %p1357_p4 }
 0x1e5   : >> { %p1360_p9 = pnand %p1359_p5, %p1353_p3 }
 0x1e7   : >> { %1363 = shalt.err (!%p1360_p9)  }
 0x1e8   : >> { %s1364_s15 = scalar_lea.vmem %s458_s22, 16  ;;  %p1371_p7 = scmp.lt.s32.totalorder %s458_s22, %s1655_s16 }
 0x1e9   : >> { %p1365_p8 = scmp.ne.s32.totalorder %s458_s22, %s1364_s15  ;;  %p1372_p10 = scmp.lt.s32.totalorder %s1684_s28, %s1364_s15 }
 0x1eb   : >> { %p1366_p2 = pnand %p1365_p8, %p880_p11  ;;  %p1373_p0 = por %p1372_p10, %p1371_p7 }
 0x1ed   : >> { %p1367_p12 = pneg %p1366_p2 }
 0x1ef   : >> { %p1374_p1 = pnand %p1373_p0, %p1367_p12 }
 0x1f1   : >> { %1377 = shalt.err (!%p1374_p1)  }
 0x1f2   : >> { %864 = dma.hbm_to_vmem [thread:$0]  (%p880_p11), %s448_s30, 16, %s458_s22, %s1861_s6 }
 0x1f3   : >> { %p2211_p3 = scmp.gt.s32.totalorder %s2060_s13, 0  ;;  %p789_p6 = scmp.lt.s32.totalorder %s2060_s13, 511 }
 0x1f4   : >> { %s478_s0 = sshll.u32 %s626_s7, 4  ;;  %s479_s0 = int_to_ptr.vmem [resolvable:$true] %s478_s0 }
 0x1f5   : >> { %s464_s5 = scalar_select %p2211_p3, %s2060_s13, 0 }
 0x1f7   : >> { %s2290_s5 = smov (!%p789_p6, %s464_s5), 511 }
 0x1f8   : >> { %s794_s26 = sshll.u32 %s2290_s5, 4 }
 0x1f9   : >> { %s469_s12 = scalar_lea.hbm %s2172_s1, %s794_s26 }
 0x1fa   : >> { %s1378_s27 = scalar_lea.hbm %s469_s12, 16  ;;  %p1383_p5 = scmp.lt.u32.totalorder %s469_s12, %s2172_s1 }
 0x1fb   : >> { %p1379_p0 = scmp.ne.s32.totalorder %s469_s12, %s1378_s27  ;;  %p1384_p9 = scmp.lt.u32.totalorder %s1675_s18, %s1378_s27 }
 0x1fc   : >> { %p1386_p2 = scmp.lt.u32.totalorder %s1378_s27, %s469_s12 }
 0x1fd   : >> { %p1380_p4 = pnand %p1379_p0, %p880_p11  ;;  %p1385_p8 = por %p1384_p9, %p1383_p5 }
 0x1ff   : >> { %p1381_p13 = pneg %p1380_p4  ;;  %p1387_p12 = por %p1386_p2, %p1385_p8 }
 0x201   : >> { %p1388_p7 = pnand %p1387_p12, %p1381_p13 }
 0x203   : >> { %1391 = shalt.err (!%p1388_p7)  }
 0x204   : >> { %s1392_s22 = scalar_lea.vmem %s479_s0, 16  ;;  %p1399_p6 = scmp.lt.s32.totalorder %s479_s0, %s1655_s16 }
 0x205   : >> { %p1393_p10 = scmp.ne.s32.totalorder %s479_s0, %s1392_s22  ;;  %p1400_p0 = scmp.lt.s32.totalorder %s1684_s28, %s1392_s22 }
 0x207   : >> { %p1394_p1 = pnand %p1393_p10, %p880_p11  ;;  %p1401_p4 = por %p1400_p0, %p1399_p6 }
 0x209   : >> { %p1395_p3 = pneg %p1394_p1 }
 0x20b   : >> { %p1402_p5 = pnand %p1401_p4, %p1395_p3 }
 0x20d   : >> { %1405 = shalt.err (!%p1402_p5)  }
 0x20e   : >> { %867 = dma.hbm_to_vmem [thread:$0]  (%p880_p11), %s469_s12, 16, %s479_s0, %s1861_s6 }
 0x20f   : >> { %s2212_s13 = sand.u32 1, %s1500_s17 }
 0x210   : >> { %s483_s7 = scalar_lea.sflag [#allocation3], %s2212_s13 }
 0x211   : >> { %1468 = dma.done.wait %s483_s7, 128 }
 0x212   : >> { %1469 = vsyncadd %s483_s7, 4294967168  ;;  %v503_v0 = vld [vmem:[%s1835_s8] sm:$0xff]  ;;  %s504_s30 = scalar_lea.vmem [#allocation6], %s1821_s19  ;;  %s2213_s9 = scalar_lea.vmem [#allocation9], %s1651_s11 }
 0x213   : >> { %v505_v1 = vld [vmem:[%s504_s30] sm:$0xff]  ;;  %s507_s10 = scalar_lea.vmem %s2213_s9, %s1821_s19 [#allocation9]  ;;  %s2214_s17 = smov %s1818_s14 }
 0x214   : >> { %v506_v2 = vadd.f32 %v505_v1, %v503_v0  ;;  %p2215_p11 = scmp.ge.s32.totalorder %s1818_s14, 2 }
 0x215   : > { %s838_s6 = sshll.u32 (%p2215_p11), %s1488_s25, 8  ;;  %s2216_s15 = scalar_lea.vmem (%p2215_p11), [#allocation9], %s1651_s11 }
 0x216   : >> { %508 = vst [vmem:[%s507_s10] sm:$0xff] %v506_v2  ;;  %305 = sbr.rel (!%p2215_p11) target bundleno = 287 (0x11f), region = 174  ;;  %s2117_s8 = scalar_lea.hbm (%p2215_p11), %s2174_s3, %s838_s6 }
 0x217   : > { %s525_s19 = sshll.u32 (%p2215_p11), %s2216_s15, 4  ;;  %s2217_s5 = sand.u32 (%p2215_p11), 1, %s1480_s23   ;;  %s2121_s19 = int_to_ptr.vmem [resolvable:$true] %s525_s19 }
 0x218   : > { %s2125_s14 = scalar_lea.sflag (%p2215_p11), [#allocation8], %s2217_s5  ;;  %s1406_s16 = scalar_lea.vmem (%p2215_p11), %s2121_s19, 256 }
 0x219   : > { %p1407_p13 = scmp.ne.s32.totalorder (%p2215_p11), %s2121_s19, %s1406_s16  ;;  %p2218_p9 = scmp.ne.s32.totalorder (%p2215_p11), %s2194_s4, 0 }
 0x21a   : > { %s1514_s25 = smov (%p2215_p11), [#allocation9]  }
 0x21b   : > { %p1408_p8 = pnand (%p2215_p11), %p1407_p13, %p2218_p9  ;;  %s1410_s18 = sshll.u32 (%p2215_p11), %s1514_s25, 4  ;;  %s1411_s18 = int_to_ptr.vmem [resolvable:$false] %s1410_s18 }
 0x21c   : > { %s1412_s28 = scalar_lea.vmem (%p2215_p11), %s1411_s18, 512  ;;  %p1413_p12 = scmp.lt.s32.totalorder (%p2215_p11), %s2121_s19, %s1411_s18 }
 0x21d   : > { %p1409_p2 = pneg %p1408_p8  ;;  %p1414_p7 = scmp.lt.s32.totalorder %s1412_s28, %s1406_s16 }
 0x21f   : > { %p1415_p10 = por %p1414_p7, %p1413_p12 }
 0x221   : > { %p1416_p1 = pnand %p1415_p10, %p1409_p2 }
 0x223   : > { %1419 = shalt.err (!%p1416_p1)
}
 0x224   : > { %s1420_s11 = scalar_lea.hbm %s2117_s8, 256  ;;  %s1424_s24 = scalar_lea.hbm %s2174_s3, 512 }
 0x225   : > { %p1421_p3 = scmp.ne.s32.totalorder %s2117_s8, %s1420_s11  ;;  %p1425_p4 = scmp.lt.u32.totalorder %s2117_s8, %s2174_s3 }
 0x226   : > { %p1426_p5 = scmp.lt.u32.totalorder %s1424_s24, %s1420_s11  ;;  %p1428_p13 = scmp.lt.u32.totalorder %s1420_s11, %s2117_s8 }
 0x227   : > { %p1422_p6 = pnand %p1421_p3, %p2218_p9 }
 0x228   : > { %p1427_p11 = por %p1426_p5, %p1425_p4 }
 0x229   : > { %p1423_p0 = pneg %p1422_p6 }
 0x22a   : > { %p1429_p8 = por %p1428_p13, %p1427_p11 }
 0x22c   : > { %p1430_p2 = pnand %p1429_p8, %p1423_p0 }
 0x22e   : > { %1433 = shalt.err (!%p1430_p2)
}
 0x22f   : > { %s1515_s27 = smov 128   ;;  %s1516_s29 = smov 8  }
 0x230   : > { %868 = dma.vmem_to_hbm [thread:$0]  (%p2218_p9), %s2121_s19, 256, %s2117_s8, %s2125_s14, %s1515_s27, %s1515_s27, %s1516_s29  }
 0x231 PF: > { %s2219_s21 = sld [smem:[#allocation59_spill]]  ;;  %s2220_s22 = sld [smem:[#allocation56_spill]] }
 0x232   : > { %s2221_s13 = sld [smem:[#allocation61_spill]] }
 0x237   : > { %p881_p12 = scmp.ge.s32.totalorder %s2219_s21, 2  ;;  %s540_s7 = sand.u32 1, %s2220_s22  }
 0x238   : > { %p2222_p7 = scmp.ne.s32.totalorder %s2221_s13, 0  ;;  %s541_s30 = scalar_lea.sflag [#allocation8], %s540_s7 }
 0x23a   : > { %p875_p10 = pnand %p881_p12, %p2222_p7 }
 0x23c   : > { %1471 = dma.done.wait (!%p875_p10), %s541_s30, 256  }
 0x23d   : > { %1473 = vsyncadd (!%p875_p10), %s541_s30, 4294967040  ;;  %s21_s27 = sadd.s32 1, %s2219_s21   ;;  %s2223_s9 = sld [smem:[#allocation57_spill]] }
 0x23e   : > { %p18_p1 = scmp.ge.s32.totalorder %s21_s27, 4   ;;  %s2224_s24 = sld [smem:[#allocation62_spill]] }
 0x23f   : > { %s2225_s25 = sld [smem:[#allocation58_spill]]  ;;  %s2226_s26 = sld [smem:[#allocation60_spill]] }
 0x240   : > { %s2227_s22 = smov %s1480_s23  ;;  %20 = sbr.rel (!%p18_p1) target bundleno = 17 (0x11), region = 185 }
 0x243   : > { %s2228_s23 = smov %s2223_s9 }
 0x247   :  { %546 = vsyncpa [#allocation7], 1 }
 0x248   :  { %548 = vsyncpa [#allocation7 + $0x1], 1 }
 0x249   :  { %549 = vsyncpa [#allocation8], 1 }
 0x24a   :  { %551 = vsyncpa [#allocation8 + $0x1], 1 }
 0x24b   :  { %552 = vsyncmov [#allocation3] }
 0x24e   :  { %s553_s4 = vpop.sfrf %552 }
 0x24f   :  { %p802_p9 = scmp.ne.s32.totalorder %s553_s4, 0 }
 0x251   :  { %557 = shalt.err (%p802_p9)  }
 0x252   :  { %559 = vsyncmov [#allocation3 + $0x1] }
 0x255   :  { %s560_s10 = vpop.sfrf %559 }
 0x256   :  { %p803_p3 = scmp.ne.s32.totalorder %s560_s10, 0 }
 0x258   :  { %564 = shalt.err (%p803_p3)  }

</bundles_post_ra>
